<compile_context>
chip_gen: v5e
topology: v5e:2x2
jax: 0.10.0
libtpu: 0.0.40
codegen_flags: <defaults>
</compile_context>

<pallas_src>
import math

import jax
import jax.numpy as jnp
from jax.experimental import pallas as pl
from jax.experimental.pallas import tpu as pltpu

_LOG2 = math.log(2.0)


def _shifted_softplus(x):
    # softplus(x) - ln(2), numerically stable
    return jnp.maximum(x, 0.0) + jnp.log1p(jnp.exp(-jnp.abs(x))) - _LOG2


def _round_up(n, m):
    return ((n + m - 1) // m) * m


def _chip_defaults():
    """(num_splits, vmem_limit_bytes) by TPU generation."""
    kind = ""
    try:
        kind = jax.devices()[0].device_kind.lower()
    except Exception:  # pragma: no cover
        pass
    if "v7" in kind:
        # 2 TensorCores/chip, 64 MiB VMEM/TC -> split pair work, keep headroom
        return 2, 48 * 1024 * 1024
    if "v5" in kind or "v6" in kind:
        # single TC, 128 MiB VMEM -> no split axis, raise the VMEM limit
        return 1, 100 * 1024 * 1024
    return 1, 48 * 1024 * 1024  # conservative fallback


# --------------------------------------------------------------------------
# Shared per-pair-tile body: filter network, gather, cutoff, scatter-add.
# --------------------------------------------------------------------------
def _accumulate_pair_tile(xf, f_ij_ref, idx_i_ref, idx_j_ref, rcut_ref,
                          w_f1_ref, b_f1_ref, w_f2_ref, b_f2_ref, agg_ref):
    cdt = xf.dtype                               # bf16 (default) or f32
    a_pad = xf.shape[0]
    tp = f_ij_ref.shape[0]

    # filter_network: Dense(n_rbf -> F, ssp) ; Dense(F -> F); then cosine cutoff
    h = jnp.dot(f_ij_ref[...], w_f1_ref[...],
                preferred_element_type=jnp.float32) + b_f1_ref[...]
    h = _shifted_softplus(h)
    wij = jnp.dot(h.astype(cdt), w_f2_ref[...],
                  preferred_element_type=jnp.float32) + b_f2_ref[...]
    wij = wij * rcut_ref[...]                    # (TP, F) * (TP, 1)

    # One shared iota feeds both one-hots, lane-dense (A_pad, TP) orientation.
    atom_ids = jax.lax.broadcasted_iota(jnp.int32, (a_pad, tp), 0)
    gather_oh = (atom_ids == idx_j_ref[...]).astype(cdt)       # (A, TP)
    scatter_oh = (atom_ids == idx_i_ref[...]).astype(cdt)      # (A, TP)

    # gather x_j = xf[idx_j] as a transposed-LHS MXU contraction: (A,TP)^T@(A,F)
    x_j = jax.lax.dot_general(gather_oh, xf, (((0,), (0,)), ((), ())),
                              preferred_element_type=jnp.float32)   # (TP, F)
    x_ij = (x_j * wij).astype(cdt)                                  # (TP, F)

    # scatter_add over idx_i: (A, TP) @ (TP, F) -> accumulate into f32 agg
    agg_ref[...] += jnp.dot(scatter_oh, x_ij,
                            preferred_element_type=jnp.float32)


# --------------------------------------------------------------------------
# Path A (num_splits == 1): fully fused kernel (in2f + pairs + f2out).
# --------------------------------------------------------------------------
def _fused_kernel(x_ref, f_ij_ref, idx_i_ref, idx_j_ref, rcut_ref,
                  w_in2f_ref, w_f1_ref, b_f1_ref, w_f2_ref, b_f2_ref,
                  w_o1_ref, b_o1_ref, w_o2_ref, b_o2_ref,
                  out_ref, xf_ref, agg_ref):
    t = pl.program_id(0)

    @pl.when(t == 0)
    def _init():
        xf = jnp.dot(x_ref[...], w_in2f_ref[...],
                     preferred_element_type=jnp.float32)
        xf_ref[...] = xf.astype(xf_ref.dtype)
        agg_ref[...] = jnp.zeros_like(agg_ref)

    _accumulate_pair_tile(xf_ref[...], f_ij_ref, idx_i_ref, idx_j_ref, rcut_ref,
                          w_f1_ref, b_f1_ref, w_f2_ref, b_f2_ref, agg_ref)

    @pl.when(t == pl.num_programs(0) - 1)
    def _finalize():
        cdt = xf_ref.dtype
        h2 = jnp.dot(agg_ref[...].astype(cdt), w_o1_ref[...],
                     preferred_element_type=jnp.float32) + b_o1_ref[...]
        h2 = _shifted_softplus(h2)
        out = jnp.dot(h2.astype(cdt), w_o2_ref[...],
                      preferred_element_type=jnp.float32) + b_o2_ref[...]
        out_ref[...] = out.astype(out_ref.dtype)


# --------------------------------------------------------------------------
# Path B (num_splits > 1, v7x): in2f / pair-partial / epilogue kernels.
# --------------------------------------------------------------------------
def _in2f_kernel(x_ref, w_ref, xf_ref):
    xf_ref[...] = jnp.dot(x_ref[...], w_ref[...],
                          preferred_element_type=jnp.float32).astype(xf_ref.dtype)


def _pair_partial_kernel(xf_ref, f_ij_ref, idx_i_ref, idx_j_ref, rcut_ref,
                         w_f1_ref, b_f1_ref, w_f2_ref, b_f2_ref, agg_ref):
    @pl.when(pl.program_id(1) == 0)
    def _init():
        agg_ref[...] = jnp.zeros_like(agg_ref)

    _accumulate_pair_tile(xf_ref[...], f_ij_ref, idx_i_ref, idx_j_ref, rcut_ref,
                          w_f1_ref, b_f1_ref, w_f2_ref, b_f2_ref, agg_ref)


def _f2out_kernel(partial_ref, w_o1_ref, b_o1_ref, w_o2_ref, b_o2_ref, out_ref):
    cdt = w_o1_ref.dtype
    agg = jnp.sum(partial_ref[...], axis=0)                         # (TA, F)
    h = jnp.dot(agg.astype(cdt), w_o1_ref[...],
                preferred_element_type=jnp.float32) + b_o1_ref[...]
    h = _shifted_softplus(h)
    out = jnp.dot(h.astype(cdt), w_o2_ref[...],
                  preferred_element_type=jnp.float32) + b_o2_ref[...]
    out_ref[...] = out.astype(out_ref.dtype)


# --------------------------------------------------------------------------
# Wrapper
# --------------------------------------------------------------------------
def schnet_interaction(x, f_ij, idx_i, idx_j, rcut_ij, params, *,
                       pair_tile=256, num_splits=None,
                       mxu_dtype=jnp.bfloat16, vmem_limit_bytes=None):
    """Pallas-backed SchNetInteraction.forward.

    Weights are stored (in_features, out_features) so x @ W == PyTorch x @ W.T.
    mxu_dtype=bfloat16 (default) runs all matmul operands in bf16 with f32 MXU
    accumulation; pass float32 for the exact path.
    """
    (w_in2f, w_f1, b_f1, w_f2, b_f2, w_o1, b_o1, w_o2, b_o2) = params
    n_atoms, n_atom_basis = x.shape
    n_pairs, n_rbf = f_ij.shape
    n_filters = w_in2f.shape[1]

    ns_default, vmem_default = _chip_defaults()
    if num_splits is None:
        num_splits = ns_default
    if vmem_limit_bytes is None:
        vmem_limit_bytes = vmem_default

    f32 = jnp.float32
    cdt = mxu_dtype

    # ---- atom padding (sublane multiple / epilogue tile) ----
    atom_tile = 256 if n_atoms > 256 else _round_up(n_atoms, 16)
    a_pad = _round_up(n_atoms, atom_tile)

    # ---- pair padding: pairs -> (num_splits, tiles_per_split, pair_tile) ----
    p_pad = _round_up(max(n_pairs, 1), num_splits * pair_tile)
    tiles_per_split = p_pad // (num_splits * pair_tile)
    pp = p_pad - n_pairs

    # padded pairs get rcut = 0 -> Wij = 0 -> x_ij = 0 -> contribute nothing
    f_ij_p = jnp.pad(f_ij.astype(cdt), ((0, pp), (0, 0)))
    rcut_2d = jnp.pad(rcut_ij.astype(f32), (0, pp)).reshape(p_pad, 1)
    # both index streams lane-dense (1, P); clamp idx_j so the gather one-hot
    # stays in range for padded pairs
    idx_i_2d = jnp.pad(idx_i.astype(jnp.int32), (0, pp)).reshape(1, p_pad)
    idx_j_2d = jnp.clip(jnp.pad(idx_j.astype(jnp.int32), (0, pp)),
                        0, n_atoms - 1).reshape(1, p_pad)

    x_p = jnp.pad(x.astype(cdt), ((0, a_pad - n_atoms), (0, 0)))

    w_in2f_c = w_in2f.astype(cdt)
    w_f1_c, w_f2_c = w_f1.astype(cdt), w_f2.astype(cdt)
    w_o1_c, w_o2_c = w_o1.astype(cdt), w_o2.astype(cdt)
    b_f1_f, b_f2_f = b_f1.astype(f32), b_f2.astype(f32)
    b_o1_f, b_o2_f = b_o1.astype(f32), b_o2.astype(f32)

    # advisory cost (FLOPs dominated by the one-hot gather/scatter matmuls)
    flops = 2 * (a_pad * n_atom_basis * n_filters
                 + p_pad * n_rbf * n_filters
                 + p_pad * n_filters * n_filters
                 + 2 * p_pad * a_pad * n_filters
                 + a_pad * n_filters * n_atom_basis
                 + a_pad * n_atom_basis * n_atom_basis)
    transc = p_pad * n_filters + a_pad * n_atom_basis
    esize = jnp.dtype(cdt).itemsize
    bytes_acc = (esize * (a_pad * n_atom_basis + p_pad * n_rbf
                          + n_atom_basis * n_filters + n_rbf * n_filters
                          + n_filters * n_filters + n_filters * n_atom_basis
                          + n_atom_basis * n_atom_basis)
                 + 4 * (3 * p_pad + 4 * n_filters
                        + num_splits * a_pad * n_filters
                        + a_pad * n_atom_basis))
    cost = pl.CostEstimate(flops=int(flops), transcendentals=int(transc),
                           bytes_accessed=int(bytes_acc))

    cparams = dict(vmem_limit_bytes=vmem_limit_bytes)

    # ================= Path A: single split -> fully fused ==================
    if num_splits == 1:
        fix = lambda t: (0, 0)
        ptile = lambda t: (t, 0)
        itile = lambda t: (0, t)

        out_pad = pl.pallas_call(
            _fused_kernel,
            out_shape=jax.ShapeDtypeStruct((a_pad, n_atom_basis), f32),
            grid_spec=pltpu.PrefetchScalarGridSpec(
                num_scalar_prefetch=0,
                grid=(tiles_per_split,),
                in_specs=[
                    pl.BlockSpec((a_pad, n_atom_basis), fix),           # x
                    pl.BlockSpec((pair_tile, n_rbf), ptile),            # f_ij
                    pl.BlockSpec((1, pair_tile), itile),                # idx_i
                    pl.BlockSpec((1, pair_tile), itile),                # idx_j
                    pl.BlockSpec((pair_tile, 1), ptile),                # rcut
                    pl.BlockSpec((n_atom_basis, n_filters), fix),       # w_in2f
                    pl.BlockSpec((n_rbf, n_filters), fix),              # w_f1
                    pl.BlockSpec((1, n_filters), fix),                  # b_f1
                    pl.BlockSpec((n_filters, n_filters), fix),          # w_f2
                    pl.BlockSpec((1, n_filters), fix),                  # b_f2
                    pl.BlockSpec((n_filters, n_atom_basis), fix),       # w_o1
                    pl.BlockSpec((1, n_atom_basis), fix),               # b_o1
                    pl.BlockSpec((n_atom_basis, n_atom_basis), fix),    # w_o2
                    pl.BlockSpec((1, n_atom_basis), fix),               # b_o2
                ],
                out_specs=pl.BlockSpec((a_pad, n_atom_basis), fix),
                scratch_shapes=[pltpu.VMEM((a_pad, n_filters), cdt),    # xf
                                pltpu.VMEM((a_pad, n_filters), f32)],   # agg
            ),
            compiler_params=pltpu.CompilerParams(
                dimension_semantics=("arbitrary",), **cparams),
            cost_estimate=cost,
        )(x_p, f_ij_p, idx_i_2d, idx_j_2d, rcut_2d,
          w_in2f_c, w_f1_c, b_f1_f, w_f2_c, b_f2_f,
          w_o1_c, b_o1_f, w_o2_c, b_o2_f)
        return out_pad[:n_atoms]

    # ============ Path B: split pair work across TensorCores (v7x) ==========
    fix1 = lambda a: (0, 0)
    fix2 = lambda s, t: (0, 0)
    ptile2 = lambda s, t: (s * tiles_per_split + t, 0)
    itile2 = lambda s, t: (0, s * tiles_per_split + t)

    # 1) xf = in2f(x), atom-tiled, stored in mxu_dtype (halves the xf stream)
    xf = pl.pallas_call(
        _in2f_kernel,
        out_shape=jax.ShapeDtypeStruct((a_pad, n_filters), cdt),
        grid_spec=pltpu.PrefetchScalarGridSpec(
            num_scalar_prefetch=0,
            grid=(a_pad // atom_tile,),
            in_specs=[pl.BlockSpec((atom_tile, n_atom_basis), lambda a: (a, 0)),
                      pl.BlockSpec((n_atom_basis, n_filters), fix1)],
            out_specs=pl.BlockSpec((atom_tile, n_filters), lambda a: (a, 0)),
        ),
        compiler_params=pltpu.CompilerParams(
            dimension_semantics=("parallel",), **cparams),
    )(x_p, w_in2f_c)

    # 2) pair-tiled partial aggregation, one (a_pad, F) partial per split
    partial = pl.pallas_call(
        _pair_partial_kernel,
        out_shape=jax.ShapeDtypeStruct((num_splits, a_pad, n_filters), f32),
        grid_spec=pltpu.PrefetchScalarGridSpec(
            num_scalar_prefetch=0,
            grid=(num_splits, tiles_per_split),
            in_specs=[
                pl.BlockSpec((a_pad, n_filters), fix2),             # xf
                pl.BlockSpec((pair_tile, n_rbf), ptile2),           # f_ij
                pl.BlockSpec((1, pair_tile), itile2),               # idx_i
                pl.BlockSpec((1, pair_tile), itile2),               # idx_j
                pl.BlockSpec((pair_tile, 1), ptile2),               # rcut
                pl.BlockSpec((n_rbf, n_filters), fix2),             # w_f1
                pl.BlockSpec((1, n_filters), fix2),                 # b_f1
                pl.BlockSpec((n_filters, n_filters), fix2),         # w_f2
                pl.BlockSpec((1, n_filters), fix2),                 # b_f2
            ],
            out_specs=pl.BlockSpec((None, a_pad, n_filters),
                                   lambda s, t: (s, 0, 0)),
        ),
        compiler_params=pltpu.CompilerParams(
            dimension_semantics=("parallel", "arbitrary"), **cparams),
        cost_estimate=cost,
    )(xf, f_ij_p, idx_i_2d, idx_j_2d, rcut_2d, w_f1_c, b_f1_f, w_f2_c, b_f2_f)

    # 3) epilogue: sum split partials + f2out, atom-parallel, lane-dense output
    out_pad = pl.pallas_call(
        _f2out_kernel,
        out_shape=jax.ShapeDtypeStruct((a_pad, n_atom_basis), f32),
        grid_spec=pltpu.PrefetchScalarGridSpec(
            num_scalar_prefetch=0,
            grid=(a_pad // atom_tile,),
            in_specs=[
                pl.BlockSpec((num_splits, atom_tile, n_filters),
                             lambda a: (0, a, 0)),                  # partials
                pl.BlockSpec((n_filters, n_atom_basis), fix1),      # w_o1
                pl.BlockSpec((1, n_atom_basis), fix1),              # b_o1
                pl.BlockSpec((n_atom_basis, n_atom_basis), fix1),   # w_o2
                pl.BlockSpec((1, n_atom_basis), fix1),              # b_o2
            ],
            out_specs=pl.BlockSpec((atom_tile, n_atom_basis), lambda a: (a, 0)),
        ),
        compiler_params=pltpu.CompilerParams(
            dimension_semantics=("parallel",), **cparams),
    )(partial, w_o1_c, b_o1_f, w_o2_c, b_o2_f)

    return out_pad[:n_atoms]


# --------------------------------------------------------------------------
# Pure-JAX reference (high-precision matmuls) and parameter init
# --------------------------------------------------------------------------
def _reference(x, f_ij, idx_i, idx_j, rcut_ij, params):
    (w_in2f, w_f1, b_f1, w_f2, b_f2, w_o1, b_o1, w_o2, b_o2) = params
    hi = jax.lax.Precision.HIGHEST
    xf = jnp.dot(x, w_in2f, precision=hi)
    h = _shifted_softplus(jnp.dot(f_ij, w_f1, precision=hi) + b_f1)
    wij = (jnp.dot(h, w_f2, precision=hi) + b_f2) * rcut_ij[:, None]
    x_j = xf[idx_j]
    x_ij = x_j * wij
    agg = jnp.zeros_like(xf).at[idx_i].add(x_ij)
    h2 = _shifted_softplus(jnp.dot(agg, w_o1, precision=hi) + b_o1)
    return jnp.dot(h2, w_o2, precision=hi) + b_o2


def _init_params(key, n_atom_basis, n_rbf, n_filters):
    ks = jax.random.split(key, 9)
    s = 0.1
    w_in2f = s * jax.random.normal(ks[0], (n_atom_basis, n_filters), jnp.float32)
    w_f1 = s * jax.random.normal(ks[1], (n_rbf, n_filters), jnp.float32)
    b_f1 = s * jax.random.normal(ks[2], (1, n_filters), jnp.float32)
    w_f2 = s * jax.random.normal(ks[3], (n_filters, n_filters), jnp.float32)
    b_f2 = s * jax.random.normal(ks[4], (1, n_filters), jnp.float32)
    w_o1 = s * jax.random.normal(ks[5], (n_filters, n_atom_basis), jnp.float32)
    b_o1 = s * jax.random.normal(ks[6], (1, n_atom_basis), jnp.float32)
    w_o2 = s * jax.random.normal(ks[7], (n_atom_basis, n_atom_basis), jnp.float32)
    b_o2 = s * jax.random.normal(ks[8], (1, n_atom_basis), jnp.float32)
    return (w_in2f, w_f1, b_f1, w_f2, b_f2, w_o1, b_o1, w_o2, b_o2)


if __name__ == "__main__":
    # Small but SchNet-consistent shapes: feature dims lane-dense (128, the
    # SchNet default), non-multiple atom/pair counts exercise the padding paths.
    n_atoms = 29
    n_pairs = 500
    n_atom_basis = 128
    n_filters = 128
    n_rbf = 32

    key = jax.random.PRNGKey(0)
    kx, kf, ki, kj, kr, kp = jax.random.split(key, 6)

    x = jax.random.normal(kx, (n_atoms, n_atom_basis), jnp.float32)
    f_ij = jax.random.normal(kf, (n_pairs, n_rbf), jnp.float32)
    idx_i = jax.random.randint(ki, (n_pairs,), 0, n_atoms, jnp.int32)
    idx_j = jax.random.randint(kj, (n_pairs,), 0, n_atoms, jnp.int32)
    rcut_ij = jax.random.uniform(kr, (n_pairs,), jnp.float32)

    params = _init_params(kp, n_atom_basis, n_rbf, n_filters)
    ref = _reference(x, f_ij, idx_i, idx_j, rcut_ij, params)

    # Exact path: f32 operands everywhere, single fused kernel.
    out_f32 = jax.block_until_ready(
        schnet_interaction(x, f_ij, idx_i, idx_j, rcut_ij, params,
                           mxu_dtype=jnp.float32, num_splits=1))
    assert out_f32.shape == (n_atoms, n_atom_basis)
    assert jnp.allclose(out_f32, ref, atol=1e-2, rtol=1e-2), "f32 path mismatch"

    # Fast path (defaults): bf16 MXU operands, f32 accumulation, chip-aware
    # num_splits / vmem limit.  NOTE: bf16 rounds data operands (xf, Wij,
    # messages), a documented accuracy trade-off vs the PyTorch reference.
    out_bf16 = jax.block_until_ready(
        schnet_interaction(x, f_ij, idx_i, idx_j, rcut_ij, params))
    assert out_bf16.shape == (n_atoms, n_atom_basis)
    assert jnp.allclose(out_bf16, ref, atol=5e-2, rtol=5e-2), "bf16 path mismatch"

    # Split path (v7x layout: per-split partials + epilogue), forced here so it
    # is compile/correctness-checked on any chip.
    out_split = jax.block_until_ready(
        schnet_interaction(x, f_ij, idx_i, idx_j, rcut_ij, params,
                           num_splits=2))
    assert out_split.shape == (n_atoms, n_atom_basis)
    assert jnp.allclose(out_split, ref, atol=5e-2, rtol=5e-2), "split path mismatch"

    print("KERNEL_OK")
</pallas_src>

<mosaic_0001>
module attributes {stable_mosaic.version = 11 : i64} {
  func.func @_fused_kernel(%arg0: i32, %arg1: memref<32x128xf32, #tpu.memory_space<vmem>>, %arg2: memref<256x32xf32, #tpu.memory_space<vmem>>, %arg3: memref<1x256xi32, #tpu.memory_space<vmem>>, %arg4: memref<1x256xi32, #tpu.memory_space<vmem>>, %arg5: memref<256x1xf32, #tpu.memory_space<vmem>>, %arg6: memref<128x128xf32, #tpu.memory_space<vmem>>, %arg7: memref<32x128xf32, #tpu.memory_space<vmem>>, %arg8: memref<1x128xf32, #tpu.memory_space<vmem>>, %arg9: memref<128x128xf32, #tpu.memory_space<vmem>>, %arg10: memref<1x128xf32, #tpu.memory_space<vmem>>, %arg11: memref<128x128xf32, #tpu.memory_space<vmem>>, %arg12: memref<1x128xf32, #tpu.memory_space<vmem>>, %arg13: memref<128x128xf32, #tpu.memory_space<vmem>>, %arg14: memref<1x128xf32, #tpu.memory_space<vmem>>, %arg15: memref<32x128xf32, #tpu.memory_space<vmem>>, %arg16: memref<32x128xf32, #tpu.memory_space<vmem>>, %arg17: memref<32x128xf32, #tpu.memory_space<vmem>>) attributes {dimension_semantics = [#tpu.dimension_semantics<arbitrary>], iteration_bounds = array<i64: 2>, scalar_prefetch = 0 : i64, scratch_operands = 2 : i64, tpu.core_type = #tpu.core_type<tc>, window_params = [{pipeline_mode = #tpu.pipeline_mode<synchronous>, transform_indices = @transform_0, window_bounds = array<i64: 32, 128>}, {transform_indices = @transform_1, window_bounds = array<i64: 256, 32>}, {transform_indices = @transform_2, window_bounds = array<i64: 1, 256>}, {transform_indices = @transform_3, window_bounds = array<i64: 1, 256>}, {transform_indices = @transform_4, window_bounds = array<i64: 256, 1>}, {pipeline_mode = #tpu.pipeline_mode<synchronous>, transform_indices = @transform_5, window_bounds = array<i64: 128, 128>}, {pipeline_mode = #tpu.pipeline_mode<synchronous>, transform_indices = @transform_6, window_bounds = array<i64: 32, 128>}, {pipeline_mode = #tpu.pipeline_mode<synchronous>, transform_indices = @transform_7, window_bounds = array<i64: 1, 128>}, {pipeline_mode = #tpu.pipeline_mode<synchronous>, transform_indices = @transform_8, window_bounds = array<i64: 128, 128>}, {pipeline_mode = #tpu.pipeline_mode<synchronous>, transform_indices = @transform_9, window_bounds = array<i64: 1, 128>}, {pipeline_mode = #tpu.pipeline_mode<synchronous>, transform_indices = @transform_10, window_bounds = array<i64: 128, 128>}, {pipeline_mode = #tpu.pipeline_mode<synchronous>, transform_indices = @transform_11, window_bounds = array<i64: 1, 128>}, {pipeline_mode = #tpu.pipeline_mode<synchronous>, transform_indices = @transform_12, window_bounds = array<i64: 128, 128>}, {pipeline_mode = #tpu.pipeline_mode<synchronous>, transform_indices = @transform_13, window_bounds = array<i64: 1, 128>}, {pipeline_mode = #tpu.pipeline_mode<synchronous>, transform_indices = @transform_14, window_bounds = array<i64: 32, 128>}]} {
    %c0_i32 = arith.constant 0 : i32
    %0 = arith.cmpi eq, %arg0, %c0_i32 : i32
    %1 = arith.extui %0 : i1 to i32
    %c0_i32_0 = arith.constant 0 : i32
    %2 = arith.cmpi ne, %1, %c0_i32_0 : i32
    scf.if %2 {
      %c0_29 = arith.constant 0 : index
      %c0_30 = arith.constant 0 : index
      %48 = vector.load %arg1[%c0_29, %c0_30] : memref<32x128xf32, #tpu.memory_space<vmem>>, vector<32x128xf32>
      %c0_31 = arith.constant 0 : index
      %c0_32 = arith.constant 0 : index
      %49 = vector.load %arg6[%c0_31, %c0_32] : memref<128x128xf32, #tpu.memory_space<vmem>>, vector<128x128xf32>
      %cst_33 = arith.constant dense<0.000000e+00> : vector<32x128xf32>
      %50 = tpu.matmul %48, %49, %cst_33 {dimension_numbers = #tpu.dot_dimension_numbers<[1], [0], [0], [1], [0, 0, 1, 1], [], []>} : vector<32x128xf32>, vector<128x128xf32>, vector<32x128xf32> -> vector<32x128xf32>
      %c0_34 = arith.constant 0 : index
      %c0_35 = arith.constant 0 : index
      %51 = vector.load %arg16[%c0_34, %c0_35] : memref<32x128xf32, #tpu.memory_space<vmem>>, vector<32x128xf32>
      tpu.vector_store %arg16[%c0_34, %c0_35], %50 {strides = array<i32>} : memref<32x128xf32, #tpu.memory_space<vmem>>, vector<32x128xf32>,
      %cst_36 = arith.constant 0.000000e+00 : f32
      %52 = vector.broadcast %cst_36 : f32 to vector<32x128xf32>
      %c0_37 = arith.constant 0 : index
      %c0_38 = arith.constant 0 : index
      %53 = vector.load %arg17[%c0_37, %c0_38] : memref<32x128xf32, #tpu.memory_space<vmem>>, vector<32x128xf32>
      tpu.vector_store %arg17[%c0_37, %c0_38], %52 {strides = array<i32>} : memref<32x128xf32, #tpu.memory_space<vmem>>, vector<32x128xf32>,
    } else {
    }
    %c0 = arith.constant 0 : index
    %c0_1 = arith.constant 0 : index
    %3 = vector.load %arg16[%c0, %c0_1] : memref<32x128xf32, #tpu.memory_space<vmem>>, vector<32x128xf32>
    %c0_2 = arith.constant 0 : index
    %c0_3 = arith.constant 0 : index
    %4 = vector.load %arg2[%c0_2, %c0_3] : memref<256x32xf32, #tpu.memory_space<vmem>>, vector<256x32xf32>
    %c0_4 = arith.constant 0 : index
    %c0_5 = arith.constant 0 : index
    %5 = vector.load %arg7[%c0_4, %c0_5] : memref<32x128xf32, #tpu.memory_space<vmem>>, vector<32x128xf32>
    %cst = arith.constant dense<0.000000e+00> : vector<256x128xf32>
    %6 = tpu.matmul %4, %5, %cst {dimension_numbers = #tpu.dot_dimension_numbers<[1], [0], [0], [1], [0, 0, 1, 1], [], []>} : vector<256x32xf32>, vector<32x128xf32>, vector<256x128xf32> -> vector<256x128xf32>
    %c0_6 = arith.constant 0 : index
    %c0_7 = arith.constant 0 : index
    %7 = vector.load %arg8[%c0_6, %c0_7] : memref<1x128xf32, #tpu.memory_space<vmem>>, vector<1x128xf32>
    %8 = vector.broadcast %7 : vector<1x128xf32> to vector<256x128xf32>
    %9 = arith.addf %6, %8 : vector<256x128xf32>
    %cst_8 = arith.constant 0.000000e+00 : f32
    %10 = vector.broadcast %cst_8 : f32 to vector<256x128xf32>
    %11 = arith.maximumf %9, %10 : vector<256x128xf32>
    %12 = math.absf %9 : vector<256x128xf32>
    %cst_9 = arith.constant 0.000000e+00 : f32
    %13 = vector.broadcast %cst_9 : f32 to vector<256x128xf32>
    %14 = arith.subf %13, %12 : vector<256x128xf32>
    %15 = math.exp %14 : vector<256x128xf32>
    %16 = math.log1p %15 : vector<256x128xf32>
    %17 = arith.addf %11, %16 : vector<256x128xf32>
    %cst_10 = arith.constant 0.693147182 : f32
    %18 = vector.broadcast %cst_10 : f32 to vector<256x128xf32>
    %19 = arith.subf %17, %18 : vector<256x128xf32>
    %c0_11 = arith.constant 0 : index
    %c0_12 = arith.constant 0 : index
    %20 = vector.load %arg9[%c0_11, %c0_12] : memref<128x128xf32, #tpu.memory_space<vmem>>, vector<128x128xf32>
    %cst_13 = arith.constant dense<0.000000e+00> : vector<256x128xf32>
    %21 = tpu.matmul %19, %20, %cst_13 {dimension_numbers = #tpu.dot_dimension_numbers<[1], [0], [0], [1], [0, 0, 1, 1], [], []>} : vector<256x128xf32>, vector<128x128xf32>, vector<256x128xf32> -> vector<256x128xf32>
    %c0_14 = arith.constant 0 : index
    %c0_15 = arith.constant 0 : index
    %22 = vector.load %arg10[%c0_14, %c0_15] : memref<1x128xf32, #tpu.memory_space<vmem>>, vector<1x128xf32>
    %23 = vector.broadcast %22 : vector<1x128xf32> to vector<256x128xf32>
    %24 = arith.addf %21, %23 : vector<256x128xf32>
    %c0_16 = arith.constant 0 : index
    %c0_17 = arith.constant 0 : index
    %25 = vector.load %arg5[%c0_16, %c0_17] : memref<256x1xf32, #tpu.memory_space<vmem>>, vector<256x1xf32>
    %26 = vector.broadcast %25 : vector<256x1xf32> to vector<256x128xf32>
    %27 = arith.mulf %24, %26 : vector<256x128xf32>
    %28 = tpu.iota {dimensions = array<i32: 0>} : vector<32x256xi32>
    %c0_18 = arith.constant 0 : index
    %c0_19 = arith.constant 0 : index
    %29 = vector.load %arg4[%c0_18, %c0_19] : memref<1x256xi32, #tpu.memory_space<vmem>>, vector<1x256xi32>
    %30 = vector.broadcast %29 : vector<1x256xi32> to vector<32x256xi32>
    %31 = arith.cmpi eq, %28, %30 : vector<32x256xi32>
    %32 = arith.extui %31 : vector<32x256xi1> to vector<32x256xi32>
    %33 = arith.sitofp %32 : vector<32x256xi32> to vector<32x256xf32>
    %c0_20 = arith.constant 0 : index
    %c0_21 = arith.constant 0 : index
    %34 = vector.load %arg3[%c0_20, %c0_21] : memref<1x256xi32, #tpu.memory_space<vmem>>, vector<1x256xi32>
    %35 = vector.broadcast %34 : vector<1x256xi32> to vector<32x256xi32>
    %36 = arith.cmpi eq, %28, %35 : vector<32x256xi32>
    %37 = arith.extui %36 : vector<32x256xi1> to vector<32x256xi32>
    %38 = arith.sitofp %37 : vector<32x256xi32> to vector<32x256xf32>
    %cst_22 = arith.constant dense<0.000000e+00> : vector<256x128xf32>
    %39 = tpu.matmul %33, %3, %cst_22 {dimension_numbers = #tpu.dot_dimension_numbers<[0], [0], [1], [1], [0, 1, 1, 1], [], []>} : vector<32x256xf32>, vector<32x128xf32>, vector<256x128xf32> -> vector<256x128xf32>
    %40 = arith.mulf %39, %27 : vector<256x128xf32>
    %c0_23 = arith.constant 0 : index
    %c0_24 = arith.constant 0 : index
    %41 = vector.load %arg17[%c0_23, %c0_24] : memref<32x128xf32, #tpu.memory_space<vmem>>, vector<32x128xf32>
    %cst_25 = arith.constant dense<0.000000e+00> : vector<32x128xf32>
    %42 = tpu.matmul %38, %40, %cst_25 {dimension_numbers = #tpu.dot_dimension_numbers<[1], [0], [0], [1], [0, 0, 1, 1], [], []>} : vector<32x256xf32>, vector<256x128xf32>, vector<32x128xf32> -> vector<32x128xf32>
    %43 = arith.addf %41, %42 : vector<32x128xf32>
    %c0_26 = arith.constant 0 : index
    %c0_27 = arith.constant 0 : index
    %44 = vector.load %arg17[%c0_26, %c0_27] : memref<32x128xf32, #tpu.memory_space<vmem>>, vector<32x128xf32>
    tpu.vector_store %arg17[%c0_26, %c0_27], %43 {strides = array<i32>} : memref<32x128xf32, #tpu.memory_space<vmem>>, vector<32x128xf32>,
    %c1_i32 = arith.constant 1 : i32
    %45 = arith.cmpi eq, %arg0, %c1_i32 : i32
    %46 = arith.extui %45 : i1 to i32
    %c0_i32_28 = arith.constant 0 : i32
    %47 = arith.cmpi ne, %46, %c0_i32_28 : i32
    scf.if %47 {
      %c0_29 = arith.constant 0 : index
      %c0_30 = arith.constant 0 : index
      %48 = vector.load %arg17[%c0_29, %c0_30] : memref<32x128xf32, #tpu.memory_space<vmem>>, vector<32x128xf32>
      %c0_31 = arith.constant 0 : index
      %c0_32 = arith.constant 0 : index
      %49 = vector.load %arg11[%c0_31, %c0_32] : memref<128x128xf32, #tpu.memory_space<vmem>>, vector<128x128xf32>
      %cst_33 = arith.constant dense<0.000000e+00> : vector<32x128xf32>
      %50 = tpu.matmul %48, %49, %cst_33 {dimension_numbers = #tpu.dot_dimension_numbers<[1], [0], [0], [1], [0, 0, 1, 1], [], []>} : vector<32x128xf32>, vector<128x128xf32>, vector<32x128xf32> -> vector<32x128xf32>
      %c0_34 = arith.constant 0 : index
      %c0_35 = arith.constant 0 : index
      %51 = vector.load %arg12[%c0_34, %c0_35] : memref<1x128xf32, #tpu.memory_space<vmem>>, vector<1x128xf32>
      %52 = vector.broadcast %51 : vector<1x128xf32> to vector<32x128xf32>
      %53 = arith.addf %50, %52 : vector<32x128xf32>
      %cst_36 = arith.constant 0.000000e+00 : f32
      %54 = vector.broadcast %cst_36 : f32 to vector<32x128xf32>
      %55 = arith.maximumf %53, %54 : vector<32x128xf32>
      %56 = math.absf %53 : vector<32x128xf32>
      %cst_37 = arith.constant 0.000000e+00 : f32
      %57 = vector.broadcast %cst_37 : f32 to vector<32x128xf32>
      %58 = arith.subf %57, %56 : vector<32x128xf32>
      %59 = math.exp %58 : vector<32x128xf32>
      %60 = math.log1p %59 : vector<32x128xf32>
      %61 = arith.addf %55, %60 : vector<32x128xf32>
      %cst_38 = arith.constant 0.693147182 : f32
      %62 = vector.broadcast %cst_38 : f32 to vector<32x128xf32>
      %63 = arith.subf %61, %62 : vector<32x128xf32>
      %c0_39 = arith.constant 0 : index
      %c0_40 = arith.constant 0 : index
      %64 = vector.load %arg13[%c0_39, %c0_40] : memref<128x128xf32, #tpu.memory_space<vmem>>, vector<128x128xf32>
      %cst_41 = arith.constant dense<0.000000e+00> : vector<32x128xf32>
      %65 = tpu.matmul %63, %64, %cst_41 {dimension_numbers = #tpu.dot_dimension_numbers<[1], [0], [0], [1], [0, 0, 1, 1], [], []>} : vector<32x128xf32>, vector<128x128xf32>, vector<32x128xf32> -> vector<32x128xf32>
      %c0_42 = arith.constant 0 : index
      %c0_43 = arith.constant 0 : index
      %66 = vector.load %arg14[%c0_42, %c0_43] : memref<1x128xf32, #tpu.memory_space<vmem>>, vector<1x128xf32>
      %67 = vector.broadcast %66 : vector<1x128xf32> to vector<32x128xf32>
      %68 = arith.addf %65, %67 : vector<32x128xf32>
      %c0_44 = arith.constant 0 : index
      %c0_45 = arith.constant 0 : index
      %69 = vector.load %arg15[%c0_44, %c0_45] : memref<32x128xf32, #tpu.memory_space<vmem>>, vector<32x128xf32>
      tpu.vector_store %arg15[%c0_44, %c0_45], %68 {strides = array<i32>} : memref<32x128xf32, #tpu.memory_space<vmem>>, vector<32x128xf32>,
    } else {
    }
    return
  }
  func.func @transform_0(%arg0: i32) -> (i32, i32) {
    %c0_i32 = arith.constant 0 : i32
    %c0_i32_0 = arith.constant 0 : i32
    %c0_i32_1 = arith.constant 0 : i32
    return %c0_i32, %c0_i32_0 : i32, i32
  }
  func.func @transform_1(%arg0: i32) -> (i32, i32) {
    %c0_i32 = arith.constant 0 : i32
    %c0_i32_0 = arith.constant 0 : i32
    return %arg0, %c0_i32 : i32, i32
  }
  func.func @transform_2(%arg0: i32) -> (i32, i32) {
    %c0_i32 = arith.constant 0 : i32
    %c0_i32_0 = arith.constant 0 : i32
    return %c0_i32, %arg0 : i32, i32
  }
  func.func @transform_3(%arg0: i32) -> (i32, i32) {
    %c0_i32 = arith.constant 0 : i32
    %c0_i32_0 = arith.constant 0 : i32
    return %c0_i32, %arg0 : i32, i32
  }
  func.func @transform_4(%arg0: i32) -> (i32, i32) {
    %c0_i32 = arith.constant 0 : i32
    %c0_i32_0 = arith.constant 0 : i32
    return %arg0, %c0_i32 : i32, i32
  }
  func.func @transform_5(%arg0: i32) -> (i32, i32) {
    %c0_i32 = arith.constant 0 : i32
    %c0_i32_0 = arith.constant 0 : i32
    %c0_i32_1 = arith.constant 0 : i32
    return %c0_i32, %c0_i32_0 : i32, i32
  }
  func.func @transform_6(%arg0: i32) -> (i32, i32) {
    %c0_i32 = arith.constant 0 : i32
    %c0_i32_0 = arith.constant 0 : i32
    %c0_i32_1 = arith.constant 0 : i32
    return %c0_i32, %c0_i32_0 : i32, i32
  }
  func.func @transform_7(%arg0: i32) -> (i32, i32) {
    %c0_i32 = arith.constant 0 : i32
    %c0_i32_0 = arith.constant 0 : i32
    %c0_i32_1 = arith.constant 0 : i32
    return %c0_i32, %c0_i32_0 : i32, i32
  }
  func.func @transform_8(%arg0: i32) -> (i32, i32) {
    %c0_i32 = arith.constant 0 : i32
    %c0_i32_0 = arith.constant 0 : i32
    %c0_i32_1 = arith.constant 0 : i32
    return %c0_i32, %c0_i32_0 : i32, i32
  }
  func.func @transform_9(%arg0: i32) -> (i32, i32) {
    %c0_i32 = arith.constant 0 : i32
    %c0_i32_0 = arith.constant 0 : i32
    %c0_i32_1 = arith.constant 0 : i32
    return %c0_i32, %c0_i32_0 : i32, i32
  }
  func.func @transform_10(%arg0: i32) -> (i32, i32) {
    %c0_i32 = arith.constant 0 : i32
    %c0_i32_0 = arith.constant 0 : i32
    %c0_i32_1 = arith.constant 0 : i32
    return %c0_i32, %c0_i32_0 : i32, i32
  }
  func.func @transform_11(%arg0: i32) -> (i32, i32) {
    %c0_i32 = arith.constant 0 : i32
    %c0_i32_0 = arith.constant 0 : i32
    %c0_i32_1 = arith.constant 0 : i32
    return %c0_i32, %c0_i32_0 : i32, i32
  }
  func.func @transform_12(%arg0: i32) -> (i32, i32) {
    %c0_i32 = arith.constant 0 : i32
    %c0_i32_0 = arith.constant 0 : i32
    %c0_i32_1 = arith.constant 0 : i32
    return %c0_i32, %c0_i32_0 : i32, i32
  }
  func.func @transform_13(%arg0: i32) -> (i32, i32) {
    %c0_i32 = arith.constant 0 : i32
    %c0_i32_0 = arith.constant 0 : i32
    %c0_i32_1 = arith.constant 0 : i32
    return %c0_i32, %c0_i32_0 : i32, i32
  }
  func.func @transform_14(%arg0: i32) -> (i32, i32) {
    %c0_i32 = arith.constant 0 : i32
    %c0_i32_0 = arith.constant 0 : i32
    %c0_i32_1 = arith.constant 0 : i32
    return %c0_i32, %c0_i32_0 : i32, i32
  }
}

</mosaic_0001>

<bundles_post_ra>
// kernel: tpu_custom_call.1
= control target key start
LH: loop header
LB: loop body
LE: loop exit
PB: predicated region body
PF: predicated region fallthrough
CT: control target
= control target key end

     0   :  { %s3785_s0 = inlined_call_operand.vmem [shape: f32[32,128], index: 0, kind: input, shape index: {}]   ;;  %s3786_s1 = inlined_call_operand.vmem [shape: f32[512,32], index: 1, kind: input, shape index: {}]   ;;  %s3787_s2 = inlined_call_operand.vmem [shape: s32[1,512], index: 2, kind: input, shape index: {}]   ;;  %s3788_s3 = inlined_call_operand.vmem [shape: s32[1,512], index: 3, kind: input, shape index: {}]   ;;  %s3789_s4 = inlined_call_operand.vmem [shape: f32[512,1], index: 4, kind: input, shape index: {}]   ;;  %s3790_s5 = inlined_call_operand.vmem [shape: f32[128,128], index: 5, kind: input, shape index: {}]   ;;  %s3791_s6 = inlined_call_operand.vmem [shape: f32[32,128], index: 6, kind: input, shape index: {}]   ;;  %s3792_s7 = inlined_call_operand.vmem [shape: f32[1,128], index: 7, kind: input, shape index: {}]   ;;  %s3793_s8 = inlined_call_operand.vmem [shape: f32[128,128], index: 8, kind: input, shape index: {}]   ;;  %s3794_s9 = inlined_call_operand.vmem [shape: f32[1,128], index: 9, kind: input, shape index: {}]   ;;  %s3795_s10 = inlined_call_operand.vmem [shape: f32[128,128], index: 10, kind: input, shape index: {}]   ;;  %s3796_s11 = inlined_call_operand.vmem [shape: f32[1,128], index: 11, kind: input, shape index: {}]   ;;  %s3797_s12 = inlined_call_operand.vmem [shape: f32[128,128], index: 12, kind: input, shape index: {}]   ;;  %s3798_s13 = inlined_call_operand.vmem [shape: f32[1,128], index: 13, kind: input, shape index: {}]   ;;  %s3799_s14 = inlined_call_operand.hbm [shape: f32[32,128], index: 14, kind: output, shape index: {}]  }
   0x1   :  { %3801 = sst [smem:[#allocation8_spill]] %s3786_s1 }
   0x2   :  { %19 = vsyncpa [#allocation5], 0  ;;  %s2928_s29 = smov 0  }
   0x3 LB: > { %3802 = sst [smem:[#allocation7_spill]] %s2844_s29  ;;  %s2934_s30 = sadd.s32 4294967295, %s2844_s29   ;;  %s2844_s29 = sphi %s2928_s29, %s25_s29  }
   0x4   : > { %p2391_p0 = scmp.ge.s32.totalorder %s2844_s29, 1  ;;  %p440_p1 = scmp.lt.s32.totalorder %s2844_s29, 3 }
   0x6   : > { %p441_p2 = pnand %p2391_p0, %p440_p1 }
   0x7   : > { %s2392_s15 = sshll.u32 (!%p441_p2), %s2934_s30, 5  ;;  %s2394_s16 = sshll.u32 (!%p441_p2), %s2934_s30, 1 }
   0x8   : > { %444 = sbr.rel (%p441_p2) target bundleno = 1310 (0x51e), region = 76  ;;  %p495_p3 = scmp.lt.s32.totalorder (!%p441_p2), %s2392_s15, 63 }
   0x9   : > { %p501_p4 = scmp.lt.s32.totalorder (!%p441_p2), %s2394_s16, 3  ;;  %s3803_s1 = sld [smem:[#allocation8_spill]] (!%p441_p2) }
   0xa   : > { %p2398_p5 = scmp.ne.s32.totalorder (!%p441_p2), %s2934_s30, 0 }
   0xd   : > { %s3806_s15 = smov (!%p495_p3, %s2392_s15), 63  ;;  %s3808_s16 = smov (!%p501_p4, %s2394_s16), 3 }
   0xe   : > { %s2393_s17 = sshll.u32 %s3806_s15, 3  ;;  %s503_s23 = scalar_lea.vmem %s3787_s2, %s3808_s16 }
   0xf   : > { %s2945_s20 = scalar_lea.vmem %s3803_s1, %s2393_s17  ;;  %s508_s26 = scalar_lea.vmem %s3788_s3, %s3808_s16 }
  0x10   : > { %s2958_s29 = scalar_lea.vmem %s3789_s4, %s2393_s17  ;;  %519 = sbr.rel (%p2398_p5) target bundleno = 187 (0xbb), region = 80 }
  0x15   : > { %v539_v0 = vld [vmem:[%s3790_s5 + $0x78] sm:$0xff]  ;;  %v538_v1 = vld [vmem:[%s3790_s5 + $0x70] sm:$0xff]  ;;  %v537_v2 = vld [vmem:[%s3790_s5 + $0x68] sm:$0xff]  ;;  %v2846_v20 = vmov 0.0  }
  0x16   : > { %2529 = vmatpush.msra.mxu2 %v539_v0  ;;  %2530 = vmatpush.msra.mxu3 %v539_v0  ;;  %v536_v3 = vld [vmem:[%s3790_s5 + $0x60] sm:$0xff]  ;;  %v535_v4 = vld [vmem:[%s3790_s5 + $0x58] sm:$0xff]  ;;  %v534_v5 = vld [vmem:[%s3790_s5 + $0x50] sm:$0xff]  ;;  %573 = vst [vmem:[#allocation3] sm:$0xff] %v2846_v20 }
  0x17   : > { %540 = vmatpush.msra.mxu0 %v539_v0  ;;  %2528 = vmatpush.msra.mxu1 %v539_v0  ;;  %v533_v6 = vld [vmem:[%s3790_s5 + $0x48] sm:$0xff]  ;;  %v532_v7 = vld [vmem:[%s3790_s5 + $0x40] sm:$0xff]  ;;  %v531_v8 = vld [vmem:[%s3790_s5 + $0x38] sm:$0xff]  ;;  %574 = vst [vmem:[#allocation3 + $0x18] sm:$0xff] %v2846_v20 }
  0x18   : > { %2532 = vmatpush.msra.mxu2 %v538_v1  ;;  %2533 = vmatpush.msra.mxu3 %v538_v1  ;;  %v530_v9 = vld [vmem:[%s3790_s5 + $0x30] sm:$0xff]  ;;  %v529_v10 = vld [vmem:[%s3790_s5 + $0x28] sm:$0xff]  ;;  %v528_v11 = vld [vmem:[%s3790_s5 + $0x20] sm:$0xff]  ;;  %575 = vst [vmem:[#allocation3 + $0x8] sm:$0xff] %v2846_v20 }
  0x19   : > { %541 = vmatpush.msra.mxu0 %v538_v1  ;;  %2531 = vmatpush.msra.mxu1 %v538_v1  ;;  %v527_v12 = vld [vmem:[%s3790_s5 + $0x18] sm:$0xff]  ;;  %v526_v13 = vld [vmem:[%s3790_s5 + $0x10] sm:$0xff]  ;;  %v525_v14 = vld [vmem:[%s3790_s5 + $0x8] sm:$0xff]  ;;  %576 = vst [vmem:[#allocation3 + $0x10] sm:$0xff] %v2846_v20 }
  0x1a   : > { %2535 = vmatpush.msra.mxu2 %v537_v2  ;;  %2536 = vmatpush.msra.mxu3 %v537_v2  ;;  %v524_v15 = vld [vmem:[%s3790_s5] sm:$0xff]  ;;  %v522_v16 = vld [vmem:[%s3785_s0 + $0x10] sm:$0xff]  ;;  %v523_v17 = vld [vmem:[%s3785_s0 + $0x18] sm:$0xff] }
  0x1b   : > { %542 = vmatpush.msra.mxu0 %v537_v2  ;;  %2534 = vmatpush.msra.mxu1 %v537_v2  ;;  %v520_v18 = vld [vmem:[%s3785_s0] sm:$0xff]  ;;  %v521_v19 = vld [vmem:[%s3785_s0 + $0x8] sm:$0xff] }
  0x1c   : > { %2538 = vmatpush.msra.mxu2 %v536_v3  ;;  %2539 = vmatpush.msra.mxu3 %v536_v3 }
  0x1d   : > { %543 = vmatpush.msra.mxu0 %v536_v3  ;;  %2537 = vmatpush.msra.mxu1 %v536_v3 }
  0x1e   : > { %2541 = vmatpush.msra.mxu2 %v535_v4  ;;  %2542 = vmatpush.msra.mxu3 %v535_v4 }
  0x1f   : > { %544 = vmatpush.msra.mxu0 %v535_v4  ;;  %2540 = vmatpush.msra.mxu1 %v535_v4 }
  0x20   : > { %2544 = vmatpush.msra.mxu2 %v534_v5  ;;  %2545 = vmatpush.msra.mxu3 %v534_v5 }
  0x21   : > { %545 = vmatpush.msra.mxu0 %v534_v5  ;;  %2543 = vmatpush.msra.mxu1 %v534_v5 }
  0x22   : > { %2547 = vmatpush.msra.mxu2 %v533_v6  ;;  %2548 = vmatpush.msra.mxu3 %v533_v6 }
  0x23   : > { %546 = vmatpush.msra.mxu0 %v533_v6  ;;  %2546 = vmatpush.msra.mxu1 %v533_v6 }
  0x24   : > { %2550 = vmatpush.msra.mxu2 %v532_v7  ;;  %2551 = vmatpush.msra.mxu3 %v532_v7 }
  0x25   : > { %547 = vmatpush.msra.mxu0 %v532_v7  ;;  %2549 = vmatpush.msra.mxu1 %v532_v7 }
  0x26   : > { %2553 = vmatpush.msra.mxu2 %v531_v8  ;;  %2554 = vmatpush.msra.mxu3 %v531_v8 }
  0x27   : > { %548 = vmatpush.msra.mxu0 %v531_v8  ;;  %2552 = vmatpush.msra.mxu1 %v531_v8 }
  0x28   : > { %2556 = vmatpush.msra.mxu2 %v530_v9  ;;  %2557 = vmatpush.msra.mxu3 %v530_v9 }
  0x29   : > { %549 = vmatpush.msra.mxu0 %v530_v9  ;;  %2555 = vmatpush.msra.mxu1 %v530_v9 }
  0x2a   : > { %2559 = vmatpush.msra.mxu2 %v529_v10  ;;  %2560 = vmatpush.msra.mxu3 %v529_v10 }
  0x2b   : > { %550 = vmatpush.msra.mxu0 %v529_v10  ;;  %2558 = vmatpush.msra.mxu1 %v529_v10 }
  0x2c   : > { %2562 = vmatpush.msra.mxu2 %v528_v11  ;;  %2563 = vmatpush.msra.mxu3 %v528_v11 }
  0x2d   : > { %551 = vmatpush.msra.mxu0 %v528_v11  ;;  %2561 = vmatpush.msra.mxu1 %v528_v11 }
  0x2e   : > { %2565 = vmatpush.msra.mxu2 %v527_v12  ;;  %2566 = vmatpush.msra.mxu3 %v527_v12 }
  0x2f   : > { %552 = vmatpush.msra.mxu0 %v527_v12  ;;  %2564 = vmatpush.msra.mxu1 %v527_v12 }
  0x30   : > { %2568 = vmatpush.msra.mxu2 %v526_v13  ;;  %2569 = vmatpush.msra.mxu3 %v526_v13 }
  0x31   : > { %553 = vmatpush.msra.mxu0 %v526_v13  ;;  %2567 = vmatpush.msra.mxu1 %v526_v13 }
  0x32   : > { %2571 = vmatpush.msra.mxu2 %v525_v14  ;;  %2572 = vmatpush.msra.mxu3 %v525_v14 }
  0x33   : > { %554 = vmatpush.msra.mxu0 %v525_v14  ;;  %2570 = vmatpush.msra.mxu1 %v525_v14 }
  0x34   : > { %2574 = vmatpush.msra.mxu2 %v524_v15  ;;  %2575 = vmatpush.msra.mxu3 %v524_v15 }
  0x35   : > { %562 = vmatmul.f32.vlgmr.msra.gmra.mxu2 %v522_v16  ;;  %565 = vmatmul.f32.vlgmr.msra.gmra.mxu3 %v523_v17 }
  0x36   : > { %555 = vmatpush.msra.mxu0 %v524_v15  ;;  %2573 = vmatpush.msra.mxu1 %v524_v15 }
  0x37   : > { %556 = vmatmul.f32.vlgmr.msra.gmra.mxu0 %v520_v18  ;;  %559 = vmatmul.f32.vlgmr.msra.gmra.mxu1 %v521_v19 }
  0xb4   : > { %v557_v21 = vpop.f32.mrf.mxu0  ;;  %v560_v22 = vpop.f32.mrf.mxu1 }
  0xb5   : > { %569 = vst [vmem:[#allocation2 + $0x10] sm:$0xff] %v557_v21 }
  0xb6   : > { %570 = vst [vmem:[#allocation2] sm:$0xff] %v560_v22 }
  0xb8   : > { %v563_v23 = vpop.f32.mrf.mxu2  ;;  %v566_v24 = vpop.f32.mrf.mxu3 }
  0xb9   : > { %571 = vst [vmem:[#allocation2 + $0x18] sm:$0xff] %v563_v23 }
  0xba   : > { %572 = vst [vmem:[#allocation2 + $0x8] sm:$0xff] %v566_v24 }
  0xbb PF: > { %v616_v25 = vld [vmem:[%s3791_s6 + $0x18] sm:$0xff]  ;;  %v615_v26 = vld [vmem:[%s3791_s6 + $0x10] sm:$0xff]  ;;  %v1700_v27 = vlaneseq  ;;  %v1705_v28 = vld [vmem:[%s508_s26] sm:$0x3]  ;;  %v2847_v34 = vmov 0.0   ;;  %vm621_vm1 = vcmask 261120  }
  0xbc   : > { %730 = vmatpush.msra.mxu0 %v616_v25  ;;  %2576 = vmatpush.msra.mxu3 %v616_v25  ;;  %v614_v29 = vld [vmem:[%s3791_s6 + $0x8] sm:$0xff]  ;;  %v1706_v31 = vperm.slane %v1705_v28, 0  ;;  %v613_v32 = vld [vmem:[%s3791_s6] sm:$0xff]  ;;  %v1707_v37 = vperm.slane %v1705_v28, 1  ;;  %v583_v45 = vld [vmem:[%s2945_s20 + $0x10] sm:$0xff]  ;;  %v2848_v52 = vmov 0  }
  0xbd   : > { %v3035_v30 = vshrl.u32 %v1700_v27, 7  ;;  %v581_v36 = vld [vmem:[%s2945_s20] sm:$0xff]  ;;  %v582_v41 = vld [vmem:[%s2945_s20 + $0x8] sm:$0xff]  ;;  %v584_v48 = vld [vmem:[%s2945_s20 + $0x18] sm:$0xff]  ;;  %2653 = vset.pattern.permute.xlu2 %v2848_v52  ;;  %p2519_p6 = scmp.ne.s32.totalorder %s2934_s30, 1 }
  0xbe   : > { %731 = vmatpush.msra.mxu0 %v615_v26  ;;  %2577 = vmatpush.msra.mxu3 %v615_v26  ;;  %v585_v50 = vld [vmem:[%s2945_s20 + $0x20] sm:$0xff]  ;;  %v1491_v51 = vld [vmem:[%s2958_s29 + $0x78] sm:$0xff]  ;;  %v586_v53 = vld [vmem:[%s2945_s20 + $0x28] sm:$0xff] }
  0xbf   : > { %vm1708_vm0 = vcmp.eq.s32.totalorder %v3035_v30, %v1706_v31  ;;  %v3042_v33 = vadd.s32 8, %v3035_v30  ;;  %vm1709_vm3 = vcmp.eq.s32.totalorder %v3035_v30, %v1707_v37  ;;  %v3049_v40 = vadd.s32 16, %v3035_v30  ;;  %1585 = vperm.xlu2 %2653, %v1491_v51   ;;  %v1490_v54 = vld [vmem:[%s2958_s29 + $0x70] sm:$0xff]  ;;  %v1489_v56 = vld [vmem:[%s2958_s29 + $0x68] sm:$0xff]  ;;  %v588_v57 = vld [vmem:[%s2945_s20 + $0x38] sm:$0xff] }
  0xc0   : > { %732 = vmatpush.msra.mxu0 %v614_v29  ;;  %v2463_v35 = vsel %vm1708_vm0, 1.0, %v2847_v34  ;;  %2578 = vmatpush.msra.mxu3 %v614_v29  ;;  %v2464_v39 = vsel %vm1709_vm3, 1.0, %v2847_v34  ;;  %v3056_v44 = vadd.s32 24, %v3035_v30  ;;  %v587_v55 = vld [vmem:[%s2945_s20 + $0x30] sm:$0xff]  ;;  %v1488_v58 = vld [vmem:[%s2958_s29 + $0x60] sm:$0xff]  ;;  %v1485_v60 = vld [vmem:[%s2958_s29 + $0x48] sm:$0xff] }
  0xc1   : > { %1759 = vxpose.xlu0.b32.start [1/4] (short) %v2463_v35, 128  ;;  %vm1710_vm2 = vcmp.eq.s32.totalorder %v3042_v33, %v1706_v31  ;;  %1791 = vxpose.xlu1.b32.start [1/4] (short) %v2464_v39, 128  ;;  %vm1712_vm4 = vcmp.eq.s32.totalorder %v3049_v40, %v1706_v31  ;;  %vm1711_vm5 = vcmp.eq.s32.totalorder %v3042_v33, %v1707_v37  ;;  %v589_v59 = vld [vmem:[%s2945_s20 + $0x40] sm:$0xff]  ;;  %v590_v61 = vld [vmem:[%s2945_s20 + $0x48] sm:$0xff]  ;;  %v591_v63 = vld [vmem:[%s2945_s20 + $0x50] sm:$0xff] }
  0xc2   : > { %733 = vmatpush.msra.mxu0 %v613_v32  ;;  %2579 = vmatpush.msra.mxu3 %v613_v32  ;;  %v2465_v38 = vsel %vm1710_vm2, 1.0, %v2847_v34  ;;  %v2466_v42 = vsel %vm1711_vm5, 1.0, %v2847_v34  ;;  %v2467_v43 = vsel %vm1712_vm4, 1.0, %v2847_v34  ;;  %vm1714_vm6 = vcmp.eq.s32.totalorder %v3056_v44, %v1706_v31  ;;  %v1484_v62 = vld [vmem:[%s2958_s29 + $0x40] sm:$0xff]  ;;  %v1483_v0 = vld [vmem:[%s2958_s29 + $0x38] sm:$0xff]  ;;  %v1482_v2 = vld [vmem:[%s2958_s29 + $0x30] sm:$0xff] }
  0xc3   : > { %2399 = vmatmul.msk.f32.vlgmr.msra.gmra.mxu0 %vm621_vm1, %v581_v36  ;;  %vm1713_vm7 = vcmp.eq.s32.totalorder %v3049_v40, %v1707_v37  ;;  %v2469_v47 = vsel %vm1714_vm6, 1.0, %v2847_v34  ;;  %vm1715_vm8 = vcmp.eq.s32.totalorder %v3056_v44, %v1707_v37  ;;  %v592_v1 = vld [vmem:[%s2945_s20 + $0x58] sm:$0xff]  ;;  %v593_v3 = vld [vmem:[%s2945_s20 + $0x60] sm:$0xff]  ;;  %v1357_v5 = vld [vmem:[%s3793_s8 + $0x70] sm:$0xff] }
  0xc4   : > { %v2468_v46 = vsel %vm1713_vm7, 1.0, %v2847_v34  ;;  %v2470_v49 = vsel %vm1715_vm8, 1.0, %v2847_v34  ;;  %v1358_v4 = vld [vmem:[%s3793_s8 + $0x78] sm:$0xff]  ;;  %v1481_v6 = vld [vmem:[%s2958_s29 + $0x28] sm:$0xff]  ;;  %v1355_v8 = vld [vmem:[%s3793_s8 + $0x60] sm:$0xff] }
  0xc5   : > { %1363 = vmatpush.msra.mxu1 %v1358_v4  ;;  %2580 = vmatpush.msrb.mxu3 %v1358_v4  ;;  %v1356_v7 = vld [vmem:[%s3793_s8 + $0x68] sm:$0xff]  ;;  %v1354_v10 = vld [vmem:[%s3793_s8 + $0x58] sm:$0xff]  ;;  %v1353_v11 = vld [vmem:[%s3793_s8 + $0x50] sm:$0xff] }
  0xc6   : > { %v594_v9 = vld [vmem:[%s2945_s20 + $0x68] sm:$0xff]  ;;  %v1480_v12 = vld [vmem:[%s2958_s29 + $0x20] sm:$0xff]  ;;  %v595_v15 = vld [vmem:[%s2945_s20 + $0x70] sm:$0xff] }
  0xc7   : > { %1580 = vperm.xlu2 %2653, %v1490_v54   ;;  %1364 = vmatpush.msra.mxu1 %v1357_v5  ;;  %v1352_v13 = vld [vmem:[%s3793_s8 + $0x48] sm:$0xff]  ;;  %v1351_v14 = vld [vmem:[%s3793_s8 + $0x40] sm:$0xff]  ;;  %v1350_v16 = vld [vmem:[%s3793_s8 + $0x38] sm:$0xff] }
  0xc8   : > { %2581 = vmatpush.msrb.mxu3 %v1357_v5  ;;  %v1349_v17 = vld [vmem:[%s3793_s8 + $0x30] sm:$0xff]  ;;  %v1479_v18 = vld [vmem:[%s2958_s29 + $0x18] sm:$0xff]  ;;  %v1348_v19 = vld [vmem:[%s3793_s8 + $0x28] sm:$0xff] }
  0xc9   : > { %1760 = vxpose.xlu0.b32.cont [2/4] (short) %v2465_v38, 128  ;;  %1792 = vxpose.xlu1.b32.cont [2/4] (short) %v2466_v42, 128  ;;  %v1347_v20 = vld [vmem:[%s3793_s8 + $0x20] sm:$0xff]  ;;  %v596_v21 = vld [vmem:[%s2945_s20 + $0x78] sm:$0xff]  ;;  %v1345_v23 = vld [vmem:[%s3793_s8 + $0x10] sm:$0xff] }
  0xca   : > { %1365 = vmatpush.msra.mxu1 %v1356_v7  ;;  %2582 = vmatpush.msrb.mxu3 %v1356_v7  ;;  %v1346_v22 = vld [vmem:[%s3793_s8 + $0x18] sm:$0xff]  ;;  %v1478_v24 = vld [vmem:[%s2958_s29 + $0x10] sm:$0xff]  ;;  %v1344_v25 = vld [vmem:[%s3793_s8 + $0x8] sm:$0xff] }
  0xcb   : > { %2400 = vmatmul.msk.f32.gmra.mxu0 %vm621_vm1, %v582_v41  ;;  %v3151_v26 = vld [vmem:[%s3792_s7] ss:$0 sm:$0xff]  ;;  %v3156_v28 = vld [vmem:[#allocation2 + $0x8] sm:$0xff]  ;;  %v3160_v32 = vld [vmem:[#allocation2 + $0x18] sm:$0xff] }
  0xcc   : > { %1366 = vmatpush.msra.mxu1 %v1355_v8  ;;  %2583 = vmatpush.msrb.mxu3 %v1355_v8  ;;  %v1343_v27 = vld [vmem:[%s3793_s8] sm:$0xff]  ;;  %v1477_v37 = vld [vmem:[%s2958_s29 + $0x8] sm:$0xff]  ;;  %v3170_v38 = vld [vmem:[#allocation2 + $0x10] sm:$0xff] }
  0xcd   : > { %1931 = vmatpush.msra.mxu2 %v3156_v28  ;;  %v597_v31 = vld [vmem:[%s2945_s20 + $0x80] sm:$0xff] }
  0xce   : > { %1367 = vmatpush.msra.mxu1 %v1354_v10  ;;  %2584 = vmatpush.msrb.mxu3 %v1354_v10  ;;  %v3165_v35 = vld [vmem:[#allocation2] sm:$0xff] }
  0xcf   : > { %1575 = vperm.xlu2 %2653, %v1489_v56   ;;  %1932 = vmatpush.msra.mxu2 %v3160_v32 }
  0xd0   : > { %1368 = vmatpush.msra.mxu1 %v1353_v11  ;;  %2585 = vmatpush.msrb.mxu3 %v1353_v11 }
  0xd1   : > { %1761 = vxpose.xlu0.b32.cont [3/4] (short) %v2467_v43, 128  ;;  %1793 = vxpose.xlu1.b32.cont [3/4] (short) %v2468_v46, 128  ;;  %v598_v43 = vld [vmem:[%s2945_s20 + $0x88] sm:$0xff] }
  0xd2   : > { %1369 = vmatpush.msra.mxu1 %v1352_v13  ;;  %2586 = vmatpush.msrb.mxu3 %v1352_v13 }
  0xd3   : > { %2401 = vmatmul.msk.f32.gmra.mxu0 %vm621_vm1, %v583_v45  ;;  %1933 = vmatpush.msra.mxu2 %v3165_v35 }
  0xd4   : > { %1370 = vmatpush.msra.mxu1 %v1351_v14  ;;  %2587 = vmatpush.msrb.mxu3 %v1351_v14  ;;  %v1506_v14 = vld [vmem:[%s2958_s29 + $0xf0] sm:$0xff] }
  0xd5   : > { %1934 = vmatpush.msra.mxu2 %v3170_v38 }
  0xd6   : > { %1371 = vmatpush.msra.mxu1 %v1350_v16  ;;  %2588 = vmatpush.msrb.mxu3 %v1350_v16  ;;  %v608_v16 = vld [vmem:[%s2945_s20 + $0xd8] sm:$0xff] }
  0xd7   : > { %1570 = vperm.xlu2 %2653, %v1488_v58   ;;  %v1507_v58 = vld [vmem:[%s2958_s29 + $0xf8] sm:$0xff]  ;;  %2426 = vmatmul.msk.f32.vlgmr.msra.gmra.mxu3 %vm621_vm1, %v608_v16 }
  0xd8   : > { %1372 = vmatpush.msra.mxu1 %v1349_v17  ;;  %2589 = vmatpush.msrb.mxu3 %v1349_v17 }
  0xd9   : > { %1762 = vxpose.xlu0.b32.end [4/4] (short) %v2469_v47, 128  ;;  %1794 = vxpose.xlu1.b32.end [4/4] (short) %v2470_v49, 128  ;;  %v1476_v47 = vld [vmem:[%s2958_s29] sm:$0xff] }
  0xda   : > { %1373 = vmatpush.msra.mxu1 %v1348_v19  ;;  %2590 = vmatpush.msrb.mxu3 %v1348_v19 }
  0xdb   : > { %2402 = vmatmul.msk.f32.gmra.mxu0 %vm621_vm1, %v584_v48 }
  0xdc   : > { %1374 = vmatpush.msra.mxu1 %v1347_v20  ;;  %2591 = vmatpush.msrb.mxu3 %v1347_v20 }
  0xde   : > { %1375 = vmatpush.msra.mxu1 %v1346_v22  ;;  %2592 = vmatpush.msrb.mxu3 %v1346_v22 }
  0xdf   : > { %1555 = vperm.xlu2 %2653, %v1485_v60  }
  0xe0   : > { %1376 = vmatpush.msra.mxu1 %v1345_v23  ;;  %2593 = vmatpush.msrb.mxu3 %v1345_v23  ;;  %v601_v23 = vld [vmem:[%s2945_s20 + $0xa0] sm:$0xff] }
  0xe2   : > { %1377 = vmatpush.msra.mxu1 %v1344_v25  ;;  %2594 = vmatpush.msrb.mxu3 %v1344_v25 }
  0xe3   : > { %2403 = vmatmul.msk.f32.gmra.mxu0 %vm621_vm1, %v585_v50 }
  0xe4   : > { %1378 = vmatpush.msra.mxu1 %v1343_v27  ;;  %2595 = vmatpush.msrb.mxu3 %v1343_v27 }
  0xe6   : > { %2596 = vmatpush.msra.mxu3 %v3156_v28 }
  0xe7   : > { %1550 = vperm.xlu2 %2653, %v1484_v62  }
  0xe8   : > { %2597 = vmatpush.msra.mxu3 %v3160_v32  ;;  %v609_v32 = vld [vmem:[%s2945_s20 + $0xe0] sm:$0xff] }
  0xe9   : > { %2427 = vmatmul.msk.f32.gmra.mxu3 %vm621_vm1, %v609_v32 }
  0xea   : > { %2598 = vmatpush.msra.mxu3 %v3165_v35 }
  0xeb   : > { %2404 = vmatmul.msk.f32.gmra.mxu0 %vm621_vm1, %v586_v53  ;;  %v599_v53 = vld [vmem:[%s2945_s20 + $0x90] sm:$0xff] }
  0xec   : > { %2599 = vmatpush.msra.mxu3 %v3170_v38 }
  0xef   : > { %1545 = vperm.xlu2 %2653, %v1483_v0  }
  0xf3   : > { %2405 = vmatmul.msk.f32.gmra.mxu0 %vm621_vm1, %v587_v55 }
  0xf7   : > { %1540 = vperm.xlu2 %2653, %v1482_v2   ;;  %v600_v2 = vld [vmem:[%s2945_s20 + $0x98] sm:$0xff] }
  0xfb   : > { %2406 = vmatmul.msk.f32.gmra.mxu0 %vm621_vm1, %v588_v57 }
  0xff   : > { %1535 = vperm.xlu2 %2653, %v1481_v6  }
 0x103   : > { %2407 = vmatmul.msk.f32.gmra.mxu0 %vm621_vm1, %v589_v59 }
 0x107   : > { %1530 = vperm.xlu2 %2653, %v1480_v12  }
 0x10b   : > { %2408 = vmatmul.msk.f32.gmra.mxu0 %vm621_vm1, %v590_v61 }
 0x10f   : > { %1525 = vperm.xlu2 %2653, %v1479_v18  }
 0x113   : > { %2409 = vmatmul.msk.f32.gmra.mxu0 %vm621_vm1, %v591_v63 }
 0x117   : > { %1520 = vperm.xlu2 %2653, %v1478_v24  }
 0x119   : > { %v3180_v51 = vpop.permute.xlu2 %1585 }
 0x11b   : > { %2410 = vmatmul.msk.f32.gmra.mxu0 %vm621_vm1, %v592_v1 }
 0x11f   : > { %1515 = vperm.xlu2 %2653, %v1477_v37  }
 0x121   : > { %v3193_v8 = vpop.permute.xlu2 %1580 }
 0x123   : > { %2411 = vmatmul.msk.f32.gmra.mxu0 %vm621_vm1, %v593_v3 }
 0x127   : > { %1510 = vperm.xlu2 %2653, %v1476_v47  }
 0x129   : > { %v3209_v37 = vpop.permute.xlu2 %1575 }
 0x12b   : > { %2412 = vmatmul.msk.f32.gmra.mxu0 %vm621_vm1, %v594_v9 }
 0x12c   : > { %2655 = vset.pattern.permute.xlu1 %v2848_v52 }
 0x12f   : > { %1665 = vperm.xlu2 %2653, %v1507_v58  }
 0x133   : > { %2413 = vmatmul.msk.f32.gmra.mxu0 %vm621_vm1, %v595_v15 }
 0x137   : > { %1660 = vperm.xlu2 %2653, %v1506_v14  }
 0x13b   : > { %2414 = vmatmul.msk.f32.gmra.mxu0 %vm621_vm1, %v596_v21 }
 0x140   : > { %v735_v29 = vpop.f32.mrf.mxu0  ;;  %2654 = vset.pattern.permute.xlu0 %v2848_v52 }
 0x141   : > { %v736_v34 = vadd.f32 %v3151_v26, %v735_v29 }
 0x143   : > { %v863_v36 = vand.u32 2147483647, %v736_v34  ;;  %2415 = vmatmul.msk.f32.gmra.mxu0 %vm621_vm1, %v597_v31  ;;  %v831_v9 = vmax.f32 %v736_v34, 0.0 }
 0x145   : > { %v895_v39 = vsub.f32 0.0, %v863_v36 }
 0x147   : > { %v927_v41 = vmul.f32 1.442695, %v895_v39 }
 0x148   : > { %v738_v42 = vpop.f32.mrf.mxu0 }
 0x149   : > { %2658 = vpow2.f32 %v927_v41  ;;  %v3175_v45 = vadd.f32 %v3151_v26, %v738_v42  ;;  %v1505_v41 = vld [vmem:[%s2958_s29 + $0xe8] sm:$0xff] }
 0x14a   : > { %1655 = vperm.xlu2 %2653, %v1505_v41   ;;  %v604_v41 = vld [vmem:[%s2945_s20 + $0xb8] sm:$0xff] }
 0x14b   : > { %v864_v46 = vand.u32 2147483647, %v3175_v45  ;;  %2416 = vmatmul.msk.f32.gmra.mxu0 %vm621_vm1, %v598_v43  ;;  %v832_v34 = vmax.f32 %v3175_v45, 0.0 }
 0x14d   : > { %v896_v48 = vsub.f32 0.0, %v864_v46 }
 0x14f   : > { %v2659_v49 = vpop.eup %2658  ;;  %v929_v50 = vmul.f32 1.442695, %v896_v48 }
 0x150   : > { %v741_v52 = vpop.f32.mrf.mxu0  ;;  %v991_v54 = vadd.f32 1.0, %v2659_v49  ;;  %v994_v56 = vmul.f32 -0.5, %v2659_v49  ;;  %v997_v61 = vand.u32 2147483647, %v2659_v49 }
 0x151   : > { %2660 = vpow2.f32 %v929_v50  ;;  %v3184_v55 = vadd.f32 %v3151_v26, %v741_v52  ;;  %v602_v52 = vld [vmem:[%s2945_s20 + $0xa8] sm:$0xff] }
 0x152   : > { %2662 = vlog2.f32 %v991_v54  ;;  %v995_v60 = vadd.f32 1.0, %v994_v56  ;;  %vm998_vm9 = vcmp.lt.f32.partialorder %v997_v61, 0.0004427343 }
 0x153   : > { %v865_v57 = vand.u32 2147483647, %v3184_v55  ;;  %2417 = vmatmul.msk.f32.gmra.mxu0 %vm621_vm1, %v599_v53  ;;  %v833_v58 = vmax.f32 %v3184_v55, 0.0 }
 0x154   : > { %v996_v7 = vmul.f32 %v2659_v49, %v995_v60 }
 0x155   : > { %v897_v59 = vsub.f32 0.0, %v865_v57 }
 0x157   : > { %v2661_v62 = vpop.eup %2660  ;;  %v931_v63 = vmul.f32 1.442695, %v897_v59 }
 0x158   : > { %v2663_v0 = vpop.eup %2662  ;;  %v744_v1 = vpop.f32.mrf.mxu0  ;;  %v1000_v3 = vadd.f32 1.0, %v2661_v62  ;;  %v1003_v4 = vmul.f32 -0.5, %v2661_v62  ;;  %v1006_v18 = vand.u32 2147483647, %v2661_v62 }
 0x159   : > { %2664 = vpow2.f32 %v931_v63  ;;  %v3191_v5 = vadd.f32 %v3151_v26, %v744_v1  ;;  %v993_v6 = vmul.f32 0.6931472, %v2663_v0  ;;  %v1504_v63 = vld [vmem:[%s2958_s29 + $0xe0] sm:$0xff] }
 0x15a   : > { %2666 = vlog2.f32 %v1000_v3  ;;  %v1004_v13 = vadd.f32 1.0, %v1003_v4  ;;  %vm1007_vm10 = vcmp.lt.f32.partialorder %v1006_v18, 0.0004427343  ;;  %1650 = vperm.xlu2 %2653, %v1504_v63   ;;  %v610_v3 = vld [vmem:[%s2945_s20 + $0xe8] sm:$0xff] }
 0x15b   : > { %v866_v10 = vand.u32 2147483647, %v3191_v5  ;;  %2418 = vmatmul.msk.f32.gmra.mxu0 %vm621_vm1, %v600_v2  ;;  %v999_v11 = vsel %vm998_vm9, %v996_v7, %v993_v6  ;;  %v3225_v2 = vpop.permute.xlu2 %1570  ;;  %2428 = vmatmul.msk.f32.gmra.mxu3 %vm621_vm1, %v610_v3 }
 0x15c   : > { %v1279_v12 = vadd.f32 %v999_v11, %v831_v9  ;;  %v1005_v24 = vmul.f32 %v2661_v62, %v1004_v13  ;;  %v603_v11 = vld [vmem:[%s2945_s20 + $0xb0] sm:$0xff] }
 0x15d   : > { %v898_v15 = vsub.f32 0.0, %v866_v10 }
 0x15e   : > { %v2431_v17 = vadd.f32 -0.6931472, %v1279_v12 }
 0x15f   : > { %v2665_v19 = vpop.eup %2664  ;;  %v933_v20 = vmul.f32 1.442695, %v898_v15 }
 0x160   : > { %v2667_v21 = vpop.eup %2666  ;;  %v747_v22 = vpop.f32.mrf.mxu0  ;;  %1379 = vmatmul.f32.vlgmr.msra.gmra.mxu1 %v2431_v17  ;;  %v1009_v25 = vadd.f32 1.0, %v2665_v19  ;;  %v1012_v31 = vmul.f32 -0.5, %v2665_v19  ;;  %v1015_v47 = vand.u32 2147483647, %v2665_v19  ;;  %v834_v17 = vmax.f32 %v3191_v5, 0.0 }
 0x161   : > { %2668 = vpow2.f32 %v933_v20  ;;  %v3203_v27 = vadd.f32 %v3151_v26, %v747_v22  ;;  %v1002_v29 = vmul.f32 0.6931472, %v2667_v21  ;;  %v1503_v21 = vld [vmem:[%s2958_s29 + $0xd8] sm:$0xff] }
 0x162   : > { %2670 = vlog2.f32 %v1009_v25  ;;  %v1013_v46 = vadd.f32 1.0, %v1012_v31  ;;  %vm1016_vm11 = vcmp.lt.f32.partialorder %v1015_v47, 0.0004427343  ;;  %1645 = vperm.xlu2 %2653, %v1503_v21   ;;  %v611_v25 = vld [vmem:[%s2945_s20 + $0xf0] sm:$0xff]  ;;  %v606_v21 = vld [vmem:[%s2945_s20 + $0xc8] sm:$0xff] }
 0x163   : > { %v867_v28 = vand.u32 2147483647, %v3203_v27  ;;  %2419 = vmatmul.msk.f32.gmra.mxu0 %vm621_vm1, %v601_v23  ;;  %v1008_v36 = vsel %vm1007_vm10, %v1005_v24, %v1002_v29  ;;  %2429 = vmatmul.msk.f32.gmra.mxu3 %vm621_vm1, %v611_v25  ;;  %v835_v47 = vmax.f32 %v3203_v27, 0.0 }
 0x164   : > { %v1280_v39 = vadd.f32 %v1008_v36, %v832_v34  ;;  %v1014_v57 = vmul.f32 %v2665_v19, %v1013_v46 }
 0x165   : > { %v899_v42 = vsub.f32 0.0, %v867_v28  ;;  %v1775_v43 = vpop.trf.xlu0  ;;  %v3241_v28 = vpop.permute.xlu2 %1555 }
 0x166   : > { %2479 = vmatmul.msk.f32.vlgmr.msra.gmra.mxu2 %vm621_vm1, %v1775_v43  ;;  %v2432_v45 = vadd.f32 -0.6931472, %v1280_v39 }
 0x167   : > { %v2669_v48 = vpop.eup %2668  ;;  %v935_v49 = vmul.f32 1.442695, %v899_v42 }
 0x168   : > { %v2671_v50 = vpop.eup %2670  ;;  %v750_v35 = vpop.f32.mrf.mxu0  ;;  %1382 = vmatmul.f32.gmra.mxu1 %v2432_v45  ;;  %v1018_v53 = vadd.f32 1.0, %v2669_v48  ;;  %v1021_v54 = vmul.f32 -0.5, %v2669_v48  ;;  %v1024_v4 = vand.u32 2147483647, %v2669_v48 }
 0x169   : > { %2672 = vpow2.f32 %v935_v49  ;;  %v3219_v56 = vadd.f32 %v3151_v26, %v750_v35  ;;  %v1011_v38 = vmul.f32 0.6931472, %v2671_v50 }
 0x16a   : > { %2674 = vlog2.f32 %v1018_v53  ;;  %v1022_v62 = vadd.f32 1.0, %v1021_v54  ;;  %vm1025_vm12 = vcmp.lt.f32.partialorder %v1024_v4, 0.0004427343 }
 0x16b   : > { %v868_v59 = vand.u32 2147483647, %v3219_v56  ;;  %2420 = vmatmul.msk.f32.gmra.mxu0 %vm621_vm1, %v602_v52  ;;  %v1017_v60 = vsel %vm1016_vm11, %v1014_v57, %v1011_v38  ;;  %v1502_v52 = vld [vmem:[%s2958_s29 + $0xd0] sm:$0xff]  ;;  %v612_v38 = vld [vmem:[%s2945_s20 + $0xf8] sm:$0xff] }
 0x16c   : > { %v1281_v61 = vadd.f32 %v1017_v60, %v833_v58  ;;  %v1023_v12 = vmul.f32 %v2669_v48, %v1022_v62  ;;  %1640 = vperm.xlu2 %2653, %v1502_v52   ;;  %2430 = vmatmul.msk.f32.gmra.mxu3 %vm621_vm1, %v612_v38  ;;  %v605_v62 = vld [vmem:[%s2945_s20 + $0xc0] sm:$0xff] }
 0x16d   : > { %v900_v0 = vsub.f32 0.0, %v868_v59  ;;  %v1776_v1 = vpop.trf.xlu0  ;;  %v3258_v3 = vpop.permute.xlu2 %1550 }
 0x16e   : > { %2480 = vmatmul.msk.f32.gmra.mxu2 %vm621_vm1, %v1776_v1  ;;  %v2433_v55 = vadd.f32 -0.6931472, %v1281_v61 }
 0x16f   : > { %v2673_v6 = vpop.eup %2672  ;;  %v937_v7 = vmul.f32 1.442695, %v900_v0 }
 0x170   : > { %v2675_v9 = vpop.eup %2674  ;;  %v753_v10 = vpop.f32.mrf.mxu0  ;;  %1385 = vmatmul.f32.gmra.mxu1 %v2433_v55  ;;  %v1027_v13 = vadd.f32 1.0, %v2673_v6  ;;  %v1030_v16 = vmul.f32 -0.5, %v2673_v6  ;;  %v1033_v31 = vand.u32 2147483647, %v2673_v6 }
 0x171   : > { %2676 = vpow2.f32 %v937_v7  ;;  %v3232_v14 = vadd.f32 %v3151_v26, %v753_v10  ;;  %v1020_v15 = vmul.f32 0.6931472, %v2675_v9 }
 0x172   : > { %2678 = vlog2.f32 %v1027_v13  ;;  %v1031_v24 = vadd.f32 1.0, %v1030_v16  ;;  %vm1034_vm13 = vcmp.lt.f32.partialorder %v1033_v31, 0.0004427343 }
 0x173   : > { %v869_v18 = vand.u32 2147483647, %v3232_v14  ;;  %2421 = vmatmul.msk.f32.gmra.mxu0 %vm621_vm1, %v603_v11  ;;  %v1026_v19 = vsel %vm1025_vm12, %v1023_v12, %v1020_v15  ;;  %v1501_v11 = vld [vmem:[%s2958_s29 + $0xc8] sm:$0xff]  ;;  %v837_v31 = vmax.f32 %v3232_v14, 0.0 }
 0x174   : > { %v1282_v20 = vadd.f32 %v1026_v19, %v834_v17  ;;  %v1032_v45 = vmul.f32 %v2673_v6, %v1031_v24  ;;  %v836_v6 = vmax.f32 %v3219_v56, 0.0  ;;  %1635 = vperm.xlu2 %2653, %v1501_v11  }
 0x175   : > { %v901_v22 = vsub.f32 0.0, %v869_v18  ;;  %v1777_v23 = vpop.trf.xlu0 }
 0x176   : > { %2481 = vmatmul.msk.f32.gmra.mxu2 %vm621_vm1, %v1777_v23  ;;  %v2434_v29 = vadd.f32 -0.6931472, %v1282_v20 }
 0x177   : > { %v2677_v5 = vpop.eup %2676  ;;  %v939_v34 = vmul.f32 1.442695, %v901_v22 }
 0x178   : > { %v2679_v36 = vpop.eup %2678  ;;  %v756_v39 = vpop.f32.mrf.mxu0  ;;  %1388 = vmatmul.f32.gmra.mxu1 %v2434_v29  ;;  %v1036_v42 = vadd.f32 1.0, %v2677_v5  ;;  %v1039_v43 = vmul.f32 -0.5, %v2677_v5  ;;  %v1042_v58 = vand.u32 2147483647, %v2677_v5 }
 0x179   : > { %2680 = vpow2.f32 %v939_v34  ;;  %v3245_v46 = vadd.f32 %v3151_v26, %v756_v39  ;;  %v1029_v32 = vmul.f32 0.6931472, %v2679_v36  ;;  %v3272_v34 = vpop.permute.xlu2 %1545 }
 0x17a   : > { %2682 = vlog2.f32 %v1036_v42  ;;  %v1040_v35 = vadd.f32 1.0, %v1039_v43  ;;  %vm1043_vm14 = vcmp.lt.f32.partialorder %v1042_v58, 0.0004427343  ;;  %v1500_v42 = vld [vmem:[%s2958_s29 + $0xc0] sm:$0xff] }
 0x17b   : > { %v870_v48 = vand.u32 2147483647, %v3245_v46  ;;  %2422 = vmatmul.msk.f32.gmra.mxu0 %vm621_vm1, %v604_v41  ;;  %v1035_v49 = vsel %vm1034_vm13, %v1032_v45, %v1029_v32  ;;  %v838_v58 = vmax.f32 %v3245_v46, 0.0 }
 0x17c   : > { %v1283_v50 = vadd.f32 %v1035_v49, %v835_v47  ;;  %v1041_v63 = vmul.f32 %v2677_v5, %v1040_v35  ;;  %1630 = vperm.xlu2 %2653, %v1500_v42   ;;  %v607_v35 = vld [vmem:[%s2945_s20 + $0xd0] sm:$0xff] }
 0x17d   : > { %v902_v53 = vsub.f32 0.0, %v870_v48  ;;  %v1778_v54 = vpop.trf.xlu0 }
 0x17e   : > { %2482 = vmatmul.msk.f32.gmra.mxu2 %vm621_vm1, %v1778_v54  ;;  %v2435_v57 = vadd.f32 -0.6931472, %v1283_v50 }
 0x17f   : > { %v2681_v27 = vpop.eup %2680  ;;  %v941_v59 = vmul.f32 1.442695, %v902_v53 }
 0x180   : > { %v2683_v60 = vpop.eup %2682  ;;  %v759_v61 = vpop.f32.mrf.mxu0  ;;  %1391 = vmatmul.f32.gmra.mxu1 %v2435_v57  ;;  %v1045_v0 = vadd.f32 1.0, %v2681_v27  ;;  %v1048_v4 = vmul.f32 -0.5, %v2681_v27  ;;  %v1051_v17 = vand.u32 2147483647, %v2681_v27 }
 0x181   : > { %2684 = vpow2.f32 %v941_v59  ;;  %v3256_v1 = vadd.f32 %v3151_v26, %v759_v61  ;;  %v1038_v55 = vmul.f32 0.6931472, %v2683_v60  ;;  %v1499_v61 = vld [vmem:[%s2958_s29 + $0xb8] sm:$0xff] }
 0x182   : > { %2686 = vlog2.f32 %v1045_v0  ;;  %v1049_v15 = vadd.f32 1.0, %v1048_v4  ;;  %vm1052_vm15 = vcmp.lt.f32.partialorder %v1051_v17, 0.0004427343  ;;  %v3284_v0 = vpop.permute.xlu2 %1540 }
 0x183   : > { %v871_v7 = vand.u32 2147483647, %v3256_v1  ;;  %2423 = vmatmul.msk.f32.gmra.mxu0 %vm621_vm1, %v605_v62  ;;  %v1044_v9 = vsel %vm1043_vm14, %v1041_v63, %v1038_v55  ;;  %v839_v17 = vmax.f32 %v3256_v1, 0.0 }
 0x184   : > { %v1284_v10 = vadd.f32 %v1044_v9, %v836_v6  ;;  %v1050_v29 = vmul.f32 %v2681_v27, %v1049_v15  ;;  %1625 = vperm.xlu2 %2653, %v1499_v61  }
 0x185   : > { %v903_v12 = vsub.f32 0.0, %v871_v7  ;;  %v1779_v13 = vpop.trf.xlu0 }
 0x186   : > { %2483 = vmatmul.msk.f32.gmra.mxu2 %vm621_vm1, %v1779_v13  ;;  %v2436_v16 = vadd.f32 -0.6931472, %v1284_v10 }
 0x187   : > { %v2685_v18 = vpop.eup %2684  ;;  %v943_v56 = vmul.f32 1.442695, %v903_v12 }
 0x188   : > { %v2687_v19 = vpop.eup %2686  ;;  %v762_v20 = vpop.f32.mrf.mxu0  ;;  %1394 = vmatmul.f32.gmra.mxu1 %v2436_v16  ;;  %v1054_v22 = vadd.f32 1.0, %v2685_v18  ;;  %v1057_v23 = vmul.f32 -0.5, %v2685_v18  ;;  %v1060_v14 = vand.u32 2147483647, %v2685_v18 }
 0x189   : > { %2688 = vpow2.f32 %v943_v56  ;;  %v3267_v24 = vadd.f32 %v3151_v26, %v762_v20  ;;  %v1047_v25 = vmul.f32 0.6931472, %v2687_v19 }
 0x18a   : > { %2690 = vlog2.f32 %v1054_v22  ;;  %v1058_v41 = vadd.f32 1.0, %v1057_v23  ;;  %vm1061_vm0 = vcmp.lt.f32.partialorder %v1060_v14, 0.0004427343  ;;  %v1498_v22 = vld [vmem:[%s2958_s29 + $0xb0] sm:$0xff]  ;;  %v3295_v1 = vpop.permute.xlu2 %1535 }
 0x18b   : > { %v872_v5 = vand.u32 2147483647, %v3267_v24  ;;  %2424 = vmatmul.msk.f32.gmra.mxu0 %vm621_vm1, %v606_v21  ;;  %v1053_v36 = vsel %vm1052_vm15, %v1050_v29, %v1047_v25  ;;  %v1486_v21 = vld [vmem:[%s2958_s29 + $0x50] sm:$0xff] }
 0x18c   : > { %v1285_v39 = vadd.f32 %v1053_v36, %v837_v31  ;;  %v1059_v52 = vmul.f32 %v2685_v18, %v1058_v41  ;;  %1620 = vperm.xlu2 %2653, %v1498_v22  }
 0x18d   : > { %v904_v43 = vsub.f32 0.0, %v872_v5  ;;  %v1780_v32 = vpop.trf.xlu0 }
 0x18e   : > { %2484 = vmatmul.msk.f32.gmra.mxu2 %vm621_vm1, %v1780_v32  ;;  %v2437_v45 = vadd.f32 -0.6931472, %v1285_v39 }
 0x18f   : > { %v2689_v47 = vpop.eup %2688  ;;  %v945_v48 = vmul.f32 1.442695, %v904_v43 }
 0x190   : > { %v2691_v49 = vpop.eup %2690  ;;  %v765_v50 = vpop.f32.mrf.mxu0  ;;  %1397 = vmatmul.f32.gmra.mxu1 %v2437_v45  ;;  %v1063_v53 = vadd.f32 1.0, %v2689_v47  ;;  %v1066_v57 = vmul.f32 -0.5, %v2689_v47  ;;  %v1069_v6 = vand.u32 2147483647, %v2689_v47 }
 0x191   : > { %2692 = vpow2.f32 %v945_v48  ;;  %v3278_v54 = vadd.f32 %v3151_v26, %v765_v50  ;;  %v1056_v38 = vmul.f32 0.6931472, %v2691_v49 }
 0x192   : > { %2694 = vlog2.f32 %v1063_v53  ;;  %v1067_v55 = vadd.f32 1.0, %v1066_v57  ;;  %vm1070_vm2 = vcmp.lt.f32.partialorder %v1069_v6, 0.0004427343 }
 0x193   : > { %v873_v27 = vand.u32 2147483647, %v3278_v54  ;;  %2425 = vmatmul.msk.f32.gmra.mxu0 %vm621_vm1, %v607_v35  ;;  %v1062_v59 = vsel %vm1061_vm0, %v1059_v52, %v1056_v38  ;;  %1560 = vperm.xlu1 %2655, %v1486_v21   ;;  %v1487_v35 = vld [vmem:[%s2958_s29 + $0x58] sm:$0xff]  ;;  %v1497_v52 = vld [vmem:[%s2958_s29 + $0xa8] sm:$0xff] }
 0x194   : > { %v1286_v60 = vadd.f32 %v1062_v59, %v838_v58  ;;  %v1068_v16 = vmul.f32 %v2689_v47, %v1067_v55  ;;  %v840_v47 = vmax.f32 %v3267_v24, 0.0  ;;  %1615 = vperm.xlu2 %2653, %v1497_v52   ;;  %v3305_v55 = vpop.permute.xlu2 %1530 }
 0x195   : > { %v905_v62 = vsub.f32 0.0, %v873_v27  ;;  %v1781_v63 = vpop.trf.xlu0 }
 0x196   : > { %2485 = vmatmul.msk.f32.gmra.mxu2 %vm621_vm1, %v1781_v63  ;;  %v2438_v4 = vadd.f32 -0.6931472, %v1286_v60 }
 0x197   : > { %v2693_v46 = vpop.eup %2692  ;;  %v947_v7 = vmul.f32 1.442695, %v905_v62 }
 0x198   : > { %v2695_v9 = vpop.eup %2694  ;;  %v768_v10 = vpop.f32.mrf.mxu0  ;;  %1400 = vmatmul.f32.gmra.mxu1 %v2438_v4  ;;  %v1072_v11 = vadd.f32 1.0, %v2693_v46  ;;  %v1075_v12 = vmul.f32 -0.5, %v2693_v46  ;;  %v1078_v31 = vand.u32 2147483647, %v2693_v46 }
 0x199   : > { %2696 = vpow2.f32 %v947_v7  ;;  %v3288_v13 = vadd.f32 %v3151_v26, %v768_v10  ;;  %v1065_v15 = vmul.f32 0.6931472, %v2695_v9  ;;  %v841_v7 = vmax.f32 %v3278_v54, 0.0 }
 0x19a   : > { %2698 = vlog2.f32 %v1072_v11  ;;  %v1076_v20 = vadd.f32 1.0, %v1075_v12  ;;  %vm1079_vm3 = vcmp.lt.f32.partialorder %v1078_v31, 0.0004427343 }
 0x19b   : > { %v874_v18 = vand.u32 2147483647, %v3288_v13  ;;  %v1071_v56 = vsel %vm1070_vm2, %v1068_v16, %v1065_v15  ;;  %v1496_v15 = vld [vmem:[%s2958_s29 + $0xa0] sm:$0xff] }
 0x19c   : > { %v1287_v19 = vadd.f32 %v1071_v56, %v839_v17  ;;  %v1077_v42 = vmul.f32 %v2693_v46, %v1076_v20  ;;  %1610 = vperm.xlu2 %2653, %v1496_v15  }
 0x19d   : > { %v906_v23 = vsub.f32 0.0, %v874_v18  ;;  %v1782_v25 = vpop.trf.xlu0 }
 0x19e   : > { %2486 = vmatmul.msk.f32.gmra.mxu2 %vm621_vm1, %v1782_v25  ;;  %v2439_v29 = vadd.f32 -0.6931472, %v1287_v19 }
 0x19f   : > { %v2697_v5 = vpop.eup %2696  ;;  %v949_v36 = vmul.f32 1.442695, %v906_v23 }
 0x1a0   : > { %v2699_v39 = vpop.eup %2698  ;;  %v771_v41 = vpop.f32.mrf.mxu0  ;;  %1403 = vmatmul.f32.gmra.mxu1 %v2439_v29  ;;  %v1081_v43 = vadd.f32 1.0, %v2697_v5  ;;  %v1084_v14 = vmul.f32 -0.5, %v2697_v5  ;;  %v1087_v27 = vand.u32 2147483647, %v2697_v5 }
 0x1a1   : > { %2700 = vpow2.f32 %v949_v36  ;;  %v3298_v32 = vadd.f32 %v3151_v26, %v771_v41  ;;  %v1074_v45 = vmul.f32 0.6931472, %v2699_v39  ;;  %v3318_v36 = vpop.permute.xlu2 %1525 }
 0x1a2   : > { %2702 = vlog2.f32 %v1081_v43  ;;  %v1085_v57 = vadd.f32 1.0, %v1084_v14  ;;  %vm1088_vm4 = vcmp.lt.f32.partialorder %v1087_v27, 0.0004427343  ;;  %v1495_v43 = vld [vmem:[%s2958_s29 + $0x98] sm:$0xff] }
 0x1a3   : > { %v875_v48 = vand.u32 2147483647, %v3298_v32  ;;  %v1080_v49 = vsel %vm1079_vm3, %v1077_v42, %v1074_v45 }
 0x1a4   : > { %v1288_v50 = vadd.f32 %v1080_v49, %v840_v47  ;;  %v1086_v46 = vmul.f32 %v2697_v5, %v1085_v57  ;;  %v842_v5 = vmax.f32 %v3288_v13, 0.0  ;;  %1605 = vperm.xlu2 %2653, %v1495_v43  }
 0x1a5   : > { %v907_v53 = vsub.f32 0.0, %v875_v48  ;;  %v1783_v38 = vpop.trf.xlu0 }
 0x1a6   : > { %2487 = vmatmul.msk.f32.gmra.mxu2 %vm621_vm1, %v1783_v38  ;;  %v2440_v58 = vadd.f32 -0.6931472, %v1288_v50 }
 0x1a7   : > { %v2701_v59 = vpop.eup %2700  ;;  %v951_v60 = vmul.f32 1.442695, %v907_v53  ;;  %1565 = vperm.xlu0 %2654, %v1487_v35  }
 0x1a8   : > { %v2703_v24 = vpop.eup %2702  ;;  %v774_v61 = vpop.f32.mrf.mxu0  ;;  %1406 = vmatmul.f32.gmra.mxu1 %v2440_v58  ;;  %v1090_v62 = vadd.f32 1.0, %v2701_v59  ;;  %v1093_v63 = vmul.f32 -0.5, %v2701_v59  ;;  %v1096_v56 = vand.u32 2147483647, %v2701_v59 }
 0x1a9   : > { %2704 = vpow2.f32 %v951_v60  ;;  %v3308_v4 = vadd.f32 %v3151_v26, %v774_v61  ;;  %v1083_v6 = vmul.f32 0.6931472, %v2703_v24 }
 0x1aa   : > { %2706 = vlog2.f32 %v1090_v62  ;;  %v1094_v12 = vadd.f32 1.0, %v1093_v63  ;;  %vm1097_vm5 = vcmp.lt.f32.partialorder %v1096_v56, 0.0004427343  ;;  %v1494_v63 = vld [vmem:[%s2958_s29 + $0x90] sm:$0xff] }
 0x1ab   : > { %v876_v9 = vand.u32 2147483647, %v3308_v4  ;;  %v1089_v10 = vsel %vm1088_vm4, %v1086_v46, %v1083_v6  ;;  %v3329_v6 = vpop.permute.xlu2 %1520 }
 0x1ac   : > { %v1289_v11 = vadd.f32 %v1089_v10, %v841_v7  ;;  %v1095_v22 = vmul.f32 %v2701_v59, %v1094_v12  ;;  %v843_v59 = vmax.f32 %v3298_v32, 0.0  ;;  %1600 = vperm.xlu2 %2653, %v1494_v63  }
 0x1ad   : > { %v908_v16 = vsub.f32 0.0, %v876_v9  ;;  %v1784_v17 = vpop.trf.xlu0 }
 0x1ae   : > { %2488 = vmatmul.msk.f32.gmra.mxu2 %vm621_vm1, %v1784_v17  ;;  %v2441_v18 = vadd.f32 -0.6931472, %v1289_v11 }
 0x1af   : > { %v2705_v19 = vpop.eup %2704  ;;  %v953_v20 = vmul.f32 1.442695, %v908_v16 }
 0x1b0   : > { %v2707_v21 = vpop.eup %2706  ;;  %v777_v54 = vpop.f32.mrf.mxu0  ;;  %1409 = vmatmul.f32.gmra.mxu1 %v2441_v18  ;;  %v1099_v23 = vadd.f32 1.0, %v2705_v19  ;;  %v1102_v31 = vmul.f32 -0.5, %v2705_v19  ;;  %v1105_v49 = vand.u32 2147483647, %v2705_v19 }
 0x1b1   : > { %2708 = vpow2.f32 %v953_v20  ;;  %v3315_v25 = vadd.f32 %v3151_v26, %v777_v54  ;;  %v1092_v29 = vmul.f32 0.6931472, %v2707_v21  ;;  %v844_v20 = vmax.f32 %v3308_v4, 0.0 }
 0x1b2   : > { %2710 = vlog2.f32 %v1099_v23  ;;  %v1103_v47 = vadd.f32 1.0, %v1102_v31  ;;  %vm1106_vm6 = vcmp.lt.f32.partialorder %v1105_v49, 0.0004427343  ;;  %v1492_v23 = vld [vmem:[%s2958_s29 + $0x80] sm:$0xff] }
 0x1b3   : > { %v877_v39 = vand.u32 2147483647, %v3315_v25  ;;  %v1098_v41 = vsel %vm1097_vm5, %v1095_v22, %v1092_v29  ;;  %v3339_v43 = vpop.permute.xlu2 %1515 }
 0x1b4   : > { %v1290_v42 = vadd.f32 %v1098_v41, %v842_v5  ;;  %v1104_v27 = vmul.f32 %v2705_v19, %v1103_v47  ;;  %1590 = vperm.xlu2 %2653, %v1492_v23  }
 0x1b5   : > { %v909_v45 = vsub.f32 0.0, %v877_v39  ;;  %v1785_v14 = vpop.trf.xlu0 }
 0x1b6   : > { %2489 = vmatmul.msk.f32.gmra.mxu2 %vm621_vm1, %v1785_v14  ;;  %v2442_v48 = vadd.f32 -0.6931472, %v1290_v42  ;;  %v3341_v14 = vpop.trf.xlu1 }
 0x1b7   : > { %v2709_v50 = vpop.eup %2708  ;;  %v955_v35 = vmul.f32 1.442695, %v909_v45 }
 0x1b8   : > { %v2711_v13 = vpop.eup %2710  ;;  %v780_v52 = vpop.f32.mrf.mxu0  ;;  %1412 = vmatmul.f32.gmra.mxu1 %v2442_v48  ;;  %v1108_v53 = vadd.f32 1.0, %v2709_v50  ;;  %v1111_v38 = vmul.f32 -0.5, %v2709_v50  ;;  %v1114_v10 = vand.u32 2147483647, %v2709_v50 }
 0x1b9   : > { %2712 = vpow2.f32 %v955_v35  ;;  %v3324_v57 = vadd.f32 %v3151_v26, %v780_v52  ;;  %v1101_v58 = vmul.f32 0.6931472, %v2711_v13  ;;  %v845_v52 = vmax.f32 %v3315_v25, 0.0 }
 0x1ba   : > { %2714 = vlog2.f32 %v1108_v53  ;;  %v1112_v62 = vadd.f32 1.0, %v1111_v38  ;;  %vm1115_vm7 = vcmp.lt.f32.partialorder %v1114_v10, 0.0004427343 }
 0x1bb   : > { %v878_v60 = vand.u32 2147483647, %v3324_v57  ;;  %v1107_v24 = vsel %vm1106_vm6, %v1104_v27, %v1101_v58  ;;  %v3349_v10 = vpop.permute.xlu2 %1510 }
 0x1bc   : > { %v1291_v61 = vadd.f32 %v1107_v24, %v843_v59  ;;  %v1113_v16 = vmul.f32 %v2709_v50, %v1112_v62 }
 0x1bd   : > { %v910_v46 = vsub.f32 0.0, %v878_v60  ;;  %v1786_v7 = vpop.trf.xlu0 }
 0x1be   : > { %2490 = vmatmul.msk.f32.gmra.mxu2 %vm621_vm1, %v1786_v7  ;;  %v2443_v9 = vadd.f32 -0.6931472, %v1291_v61 }
 0x1bf   : > { %v2713_v11 = vpop.eup %2712  ;;  %v957_v12 = vmul.f32 1.442695, %v910_v46 }
 0x1c0   : > { %v2715_v32 = vpop.eup %2714  ;;  %v783_v15 = vpop.f32.mrf.mxu0  ;;  %1415 = vmatmul.f32.gmra.mxu1 %v2443_v9  ;;  %v1117_v17 = vadd.f32 1.0, %v2713_v11  ;;  %v1120_v19 = vmul.f32 -0.5, %v2713_v11  ;;  %v1123_v41 = vand.u32 2147483647, %v2713_v11 }
 0x1c1   : > { %2716 = vpow2.f32 %v957_v12  ;;  %v3333_v18 = vadd.f32 %v3151_v26, %v783_v15  ;;  %v1110_v56 = vmul.f32 0.6931472, %v2715_v32  ;;  %v3354_v15 = vpop.trf.xlu1 }
 0x1c2   : > { %2718 = vlog2.f32 %v1117_v17  ;;  %v1121_v5 = vadd.f32 1.0, %v1120_v19  ;;  %vm1124_vm8 = vcmp.lt.f32.partialorder %v1123_v41, 0.0004427343 }
 0x1c3   : > { %v879_v21 = vand.u32 2147483647, %v3333_v18  ;;  %v1116_v54 = vsel %vm1115_vm7, %v1113_v16, %v1110_v56  ;;  %v846_v16 = vmax.f32 %v3324_v57, 0.0 }
 0x1c4   : > { %v1292_v22 = vadd.f32 %v1116_v54, %v844_v20  ;;  %v1122_v13 = vmul.f32 %v2713_v11, %v1121_v5  ;;  %v1493_v20 = vld [vmem:[%s2958_s29 + $0x88] sm:$0xff] }
 0x1c5   : > { %v911_v29 = vsub.f32 0.0, %v879_v21  ;;  %v1787_v31 = vpop.trf.xlu0  ;;  %1595 = vperm.xlu1 %2655, %v1493_v20  }
 0x1c6   : > { %2491 = vmatmul.msk.f32.gmra.mxu2 %vm621_vm1, %v1787_v31  ;;  %v2444_v39 = vadd.f32 -0.6931472, %v1292_v22 }
 0x1c7   : > { %v2717_v42 = vpop.eup %2716  ;;  %v959_v45 = vmul.f32 1.442695, %v911_v29 }
 0x1c8   : > { %v2719_v4 = vpop.eup %2718  ;;  %v786_v47 = vpop.f32.mrf.mxu0  ;;  %1418 = vmatmul.f32.gmra.mxu1 %v2444_v39  ;;  %v1126_v48 = vadd.f32 1.0, %v2717_v42  ;;  %v1129_v49 = vmul.f32 -0.5, %v2717_v42  ;;  %v1132_v61 = vand.u32 2147483647, %v2717_v42 }
 0x1c9   : > { %2720 = vpow2.f32 %v959_v45  ;;  %v3344_v50 = vadd.f32 %v3151_v26, %v786_v47  ;;  %v1119_v35 = vmul.f32 0.6931472, %v2719_v4 }
 0x1ca   : > { %2722 = vlog2.f32 %v1126_v48  ;;  %v1130_v27 = vadd.f32 1.0, %v1129_v49  ;;  %vm1133_vm9 = vcmp.lt.f32.partialorder %v1132_v61, 0.0004427343  ;;  %v847_v48 = vmax.f32 %v3333_v18, 0.0  ;;  %v3364_v49 = vpop.permute.xlu2 %1665 }
 0x1cb   : > { %v880_v53 = vand.u32 2147483647, %v3344_v50  ;;  %v1125_v38 = vsel %vm1124_vm8, %v1122_v13, %v1119_v35 }
 0x1cc   : > { %v1293_v58 = vadd.f32 %v1125_v38, %v845_v52  ;;  %v1131_v25 = vmul.f32 %v2717_v42, %v1130_v27  ;;  %v3367_v52 = vpop.trf.xlu1 }
 0x1cd   : > { %v912_v59 = vsub.f32 0.0, %v880_v53  ;;  %v1788_v60 = vpop.trf.xlu0 }
 0x1ce   : > { %2492 = vmatmul.msk.f32.gmra.mxu2 %vm621_vm1, %v1788_v60  ;;  %v2445_v24 = vadd.f32 -0.6931472, %v1293_v58 }
 0x1cf   : > { %v2721_v62 = vpop.eup %2720  ;;  %v961_v63 = vmul.f32 1.442695, %v912_v59 }
 0x1d0   : > { %v2723_v46 = vpop.eup %2722  ;;  %v789_v7 = vpop.f32.mrf.mxu0  ;;  %1421 = vmatmul.f32.gmra.mxu1 %v2445_v24  ;;  %v1135_v9 = vadd.f32 1.0, %v2721_v62  ;;  %v1138_v32 = vmul.f32 -0.5, %v2721_v62  ;;  %v1141_v29 = vand.u32 2147483647, %v2721_v62 }
 0x1d1   : > { %2724 = vpow2.f32 %v961_v63  ;;  %v3352_v11 = vadd.f32 %v3151_v26, %v789_v7  ;;  %v1128_v12 = vmul.f32 0.6931472, %v2723_v46 }
 0x1d2   : > { %2726 = vlog2.f32 %v1135_v9  ;;  %v1139_v22 = vadd.f32 1.0, %v1138_v32  ;;  %vm1142_vm10 = vcmp.lt.f32.partialorder %v1141_v29, 0.0004427343 }
 0x1d3   : > { %v881_v17 = vand.u32 2147483647, %v3352_v11  ;;  %v1134_v56 = vsel %vm1133_vm9, %v1131_v25, %v1128_v12  ;;  %v3378_v25 = vld [vmem:[%s3792_s7] ss:$0 sm:$0xff] }
 0x1d4   : > { %v1294_v19 = vadd.f32 %v1134_v56, %v846_v16  ;;  %v1140_v47 = vmul.f32 %v2721_v62, %v1139_v22  ;;  %v3373_v62 = vld [vmem:[%s3794_s9] ss:$0 sm:$0xff]  ;;  %v848_v16 = vmax.f32 %v3344_v50, 0.0  ;;  %v3388_v29 = vpop.trf.xlu1 }
 0x1d5   : > { %v913_v21 = vsub.f32 0.0, %v881_v17  ;;  %v1789_v54 = vpop.trf.xlu0 }
 0x1d6   : > { %2493 = vmatmul.msk.f32.gmra.mxu2 %vm621_vm1, %v1789_v54  ;;  %v2446_v23 = vadd.f32 -0.6931472, %v1294_v19 }
 0x1d7   : > { %v2725_v31 = vpop.eup %2724  ;;  %v963_v5 = vmul.f32 1.442695, %v913_v21  ;;  %v3386_v21 = vpop.permute.xlu2 %1660 }
 0x1d8   : > { %v2727_v39 = vpop.eup %2726  ;;  %v792_v41 = vpop.f32.mrf.mxu0  ;;  %1424 = vmatmul.f32.gmra.mxu1 %v2446_v23  ;;  %v1144_v57 = vadd.f32 1.0, %v2725_v31  ;;  %v1147_v42 = vmul.f32 -0.5, %v2725_v31  ;;  %v1150_v60 = vand.u32 2147483647, %v2725_v31 }
 0x1d9   : > { %2728 = vpow2.f32 %v963_v5  ;;  %v3361_v45 = vadd.f32 %v3151_v26, %v792_v41  ;;  %v1137_v4 = vmul.f32 0.6931472, %v2727_v39 }
 0x1da   : > { %2730 = vlog2.f32 %v1144_v57  ;;  %v1148_v38 = vadd.f32 1.0, %v1147_v42  ;;  %vm1151_vm11 = vcmp.lt.f32.partialorder %v1150_v60, 0.0004427343 }
 0x1db   : > { %v882_v35 = vand.u32 2147483647, %v3361_v45  ;;  %v1143_v13 = vsel %vm1142_vm10, %v1140_v47, %v1137_v4 }
 0x1dc   : > { %v1295_v53 = vadd.f32 %v1143_v13, %v847_v48  ;;  %v1149_v46 = vmul.f32 %v2725_v31, %v1148_v38 }
 0x1dd   : > { %v914_v58 = vsub.f32 0.0, %v882_v35  ;;  %v1790_v27 = vpop.trf.xlu0  ;;  %v1380_v59 = vpop.f32.mrf.mxu1 }
 0x1de   : > { %2494 = vmatmul.msk.f32.gmra.mxu2 %vm621_vm1, %v1790_v27  ;;  %v2447_v26 = vadd.f32 -0.6931472, %v1295_v53  ;;  %v1381_v19 = vadd.f32 %v3373_v62, %v1380_v59 }
 0x1df   : > { %v2729_v24 = vpop.eup %2728  ;;  %v965_v18 = vmul.f32 1.442695, %v914_v58 }
 0x1e0   : > { %v2731_v61 = vpop.eup %2730  ;;  %v795_v63 = vpop.f32.mrf.mxu0  ;;  %1427 = vmatmul.f32.gmra.mxu1 %v2447_v26  ;;  %v1153_v7 = vadd.f32 1.0, %v2729_v24  ;;  %v1156_v32 = vmul.f32 -0.5, %v2729_v24  ;;  %v1159_v50 = vand.u32 2147483647, %v2729_v24  ;;  %v1668_v57 = vmul.f32 %v3349_v10, %v1381_v19 }
 0x1e1   : > { %2732 = vpow2.f32 %v965_v18  ;;  %v3381_v9 = vadd.f32 %v3378_v25, %v795_v63  ;;  %v1146_v12 = vmul.f32 0.6931472, %v2731_v61 }
 0x1e2   : > { %2734 = vlog2.f32 %v1153_v7  ;;  %v1157_v23 = vadd.f32 1.0, %v1156_v32  ;;  %vm1160_vm12 = vcmp.lt.f32.partialorder %v1159_v50, 0.0004427343 }
 0x1e3   : > { %v883_v17 = vand.u32 2147483647, %v3381_v9  ;;  %v1152_v56 = vsel %vm1151_vm11, %v1149_v46, %v1146_v12  ;;  %v3405_v12 = vpop.trf.xlu1 }
 0x1e4   : > { %v1296_v20 = vadd.f32 %v1152_v56, %v848_v16  ;;  %v1158_v53 = vmul.f32 %v2729_v24, %v1157_v23 }
 0x1e5   : > { %v915_v54 = vsub.f32 0.0, %v883_v17  ;;  %v1383_v22 = vpop.f32.mrf.mxu1 }
 0x1e6   : > { %2495 = vmatmul.msk.f32.gmra.mxu2 %vm621_vm1, %v3341_v14  ;;  %v2448_v31 = vadd.f32 -0.6931472, %v1296_v20  ;;  %v849_v14 = vmax.f32 %v3352_v11, 0.0  ;;  %v1384_v27 = vadd.f32 %v3373_v62, %v1383_v22  ;;  %v3403_v11 = vpop.permute.xlu2 %1655  ;;  %v850_v22 = vmax.f32 %v3361_v45, 0.0 }
 0x1e7   : > { %v2733_v5 = vpop.eup %2732  ;;  %v967_v39 = vmul.f32 1.442695, %v915_v54 }
 0x1e8   : > { %v2735_v41 = vpop.eup %2734  ;;  %v798_v42 = vpop.f32.mrf.mxu0  ;;  %1430 = vmatmul.f32.gmra.mxu1 %v2448_v31  ;;  %v1162_v4 = vadd.f32 1.0, %v2733_v5  ;;  %v1165_v47 = vmul.f32 -0.5, %v2733_v5  ;;  %v1168_v24 = vand.u32 2147483647, %v2733_v5  ;;  %v1669_v32 = vmul.f32 %v3339_v43, %v1384_v27 }
 0x1e9   : > { %2736 = vpow2.f32 %v967_v39  ;;  %v3394_v48 = vadd.f32 %v3378_v25, %v798_v42  ;;  %v1936_v35 = vpop.f32.mrf.mxu2  ;;  %v1155_v13 = vmul.f32 0.6931472, %v2735_v41 }
 0x1ea   : > { %v3397_v38 = vmul.f32 %v1936_v35, %v1668_v57  ;;  %2738 = vlog2.f32 %v1162_v4  ;;  %v1166_v26 = vadd.f32 1.0, %v1165_v47  ;;  %vm1169_vm13 = vcmp.lt.f32.partialorder %v1168_v24, 0.0004427343 }
 0x1eb   : > { %v884_v58 = vand.u32 2147483647, %v3394_v48  ;;  %v1161_v10 = vsel %vm1160_vm12, %v1158_v53, %v1155_v13 }
 0x1ec   : > { %v1297_v59 = vadd.f32 %v1161_v10, %v849_v14  ;;  %v1167_v17 = vmul.f32 %v2733_v5, %v1166_v26 }
 0x1ed   : > { %v916_v60 = vsub.f32 0.0, %v884_v58  ;;  %v1386_v18 = vpop.f32.mrf.mxu1 }
 0x1ee   : > { %2496 = vmatmul.msk.f32.gmra.mxu2 %vm621_vm1, %v3354_v15  ;;  %v2449_v61 = vadd.f32 -0.6931472, %v1297_v59  ;;  %v1387_v50 = vadd.f32 %v3373_v62, %v1386_v18  ;;  %v3419_v10 = vpop.permute.xlu2 %1650  ;;  %v851_v18 = vmax.f32 %v3381_v9, 0.0 }
 0x1ef   : > { %v2737_v63 = vpop.eup %2736  ;;  %v969_v46 = vmul.f32 1.442695, %v916_v60  ;;  %v3424_v60 = vpop.trf.xlu1 }
 0x1f0   : > { %v2739_v7 = vpop.eup %2738  ;;  %v801_v16 = vpop.f32.mrf.mxu0  ;;  %1433 = vmatmul.f32.gmra.mxu1 %v2449_v61  ;;  %v1171_v56 = vadd.f32 1.0, %v2737_v63  ;;  %v1174_v54 = vmul.f32 -0.5, %v2737_v63  ;;  %v1177_v4 = vand.u32 2147483647, %v2737_v63  ;;  %v1670_v13 = vmul.f32 %v3329_v6, %v1387_v50 }
 0x1f1   : > { %2740 = vpow2.f32 %v969_v46  ;;  %v3409_v19 = vadd.f32 %v3378_v25, %v801_v16  ;;  %v1939_v15 = vpop.f32.mrf.mxu2  ;;  %v1164_v20 = vmul.f32 0.6931472, %v2739_v7  ;;  %v816_v6 = vpop.f32.mrf.mxu3 }
 0x1f2   : > { %v3412_v23 = vmul.f32 %v1939_v15, %v1669_v32  ;;  %2742 = vlog2.f32 %v1171_v56  ;;  %v1175_v57 = vadd.f32 1.0, %v1174_v54  ;;  %vm1178_vm14 = vcmp.lt.f32.partialorder %v1177_v4, 0.0004427343 }
 0x1f3   : > { %v885_v31 = vand.u32 2147483647, %v3409_v19  ;;  %v1170_v43 = vsel %vm1169_vm13, %v1167_v17, %v1164_v20 }
 0x1f4   : > { %v1298_v5 = vadd.f32 %v1170_v43, %v850_v22 }
 0x1f5   : > { %v917_v39 = vsub.f32 0.0, %v885_v31  ;;  %v1389_v41 = vpop.f32.mrf.mxu1 }
 0x1f6   : > { %2497 = vmatmul.msk.f32.gmra.mxu2 %vm621_vm1, %v3367_v52  ;;  %v2450_v42 = vadd.f32 -0.6931472, %v1298_v5  ;;  %v1176_v52 = vmul.f32 %v2737_v63, %v1175_v57  ;;  %v1390_v7 = vadd.f32 %v3373_v62, %v1389_v41  ;;  %v3440_v4 = vpop.permute.xlu2 %1645 }
 0x1f7   : > { %v2741_v47 = vpop.eup %2740  ;;  %v971_v45 = vmul.f32 1.442695, %v917_v39 }
 0x1f8   : > { %v2743_v35 = vpop.eup %2742  ;;  %v804_v53 = vpop.f32.mrf.mxu0  ;;  %1436 = vmatmul.f32.gmra.mxu1 %v2450_v42  ;;  %v1180_v14 = vadd.f32 1.0, %v2741_v47  ;;  %v1183_v58 = vmul.f32 -0.5, %v2741_v47  ;;  %v1186_v15 = vand.u32 2147483647, %v2741_v47  ;;  %v1671_v31 = vmul.f32 %v3318_v36, %v1390_v7 }
 0x1f9   : > { %2744 = vpow2.f32 %v971_v45  ;;  %v3422_v27 = vadd.f32 %v3378_v25, %v804_v53  ;;  %v1942_v59 = vpop.f32.mrf.mxu2  ;;  %v1173_v26 = vmul.f32 0.6931472, %v2743_v35  ;;  %v3444_v36 = vadd.f32 %v3378_v25, %v816_v6  ;;  %v3446_v35 = vpop.trf.xlu1 }
 0x1fa   : > { %v3427_v61 = vmul.f32 %v1942_v59, %v1670_v13  ;;  %2746 = vlog2.f32 %v1180_v14  ;;  %v1184_v16 = vadd.f32 1.0, %v1183_v58  ;;  %vm1187_vm15 = vcmp.lt.f32.partialorder %v1186_v15, 0.0004427343  ;;  %v819_v14 = vpop.f32.mrf.mxu3 }
 0x1fb   : > { %v886_v24 = vand.u32 2147483647, %v3422_v27  ;;  %v1179_v46 = vsel %vm1178_vm14, %v1176_v52, %v1173_v26  ;;  %v890_v6 = vand.u32 2147483647, %v3444_v36 }
 0x1fc   : > { %v1299_v32 = vadd.f32 %v1179_v46, %v851_v18  ;;  %v1185_v43 = vmul.f32 %v2741_v47, %v1184_v16 }
 0x1fd   : > { %v918_v17 = vsub.f32 0.0, %v886_v24  ;;  %v1392_v56 = vpop.f32.mrf.mxu1 }
 0x1fe   : > { %2498 = vmatmul.msk.f32.gmra.mxu2 %vm621_vm1, %v3388_v29  ;;  %v2451_v63 = vadd.f32 -0.6931472, %v1299_v32  ;;  %v852_v29 = vmax.f32 %v3394_v48, 0.0  ;;  %v1393_v13 = vadd.f32 %v3373_v62, %v1392_v56 }
 0x1ff   : > { %v2745_v9 = vpop.eup %2744  ;;  %v973_v20 = vmul.f32 1.442695, %v918_v17 }
 0x200   : > { %v2747_v54 = vpop.eup %2746  ;;  %v807_v22 = vpop.f32.mrf.mxu0  ;;  %1439 = vmatmul.f32.gmra.mxu1 %v2451_v63  ;;  %v1189_v50 = vadd.f32 1.0, %v2745_v9  ;;  %v1192_v57 = vmul.f32 -0.5, %v2745_v9  ;;  %v1195_v52 = vand.u32 2147483647, %v2745_v9  ;;  %v1672_v32 = vmul.f32 %v3305_v55, %v1393_v13 }
 0x201   : > { %2748 = vpow2.f32 %v973_v20  ;;  %v3435_v5 = vadd.f32 %v3378_v25, %v807_v22  ;;  %v1945_v39 = vpop.f32.mrf.mxu2  ;;  %v1182_v41 = vmul.f32 0.6931472, %v2747_v54  ;;  %v853_v20 = vmax.f32 %v3409_v19, 0.0  ;;  %v3466_v19 = vpop.trf.xlu1 }
 0x202   : > { %v3438_v42 = vmul.f32 %v1945_v39, %v1671_v31  ;;  %2750 = vlog2.f32 %v1189_v50  ;;  %v1193_v59 = vadd.f32 1.0, %v1192_v57  ;;  %vm1196_vm0 = vcmp.lt.f32.partialorder %v1195_v52, 0.0004427343  ;;  %v3464_v57 = vpop.permute.xlu2 %1640 }
 0x203   : > { %v887_v45 = vand.u32 2147483647, %v3435_v5  ;;  %v1188_v47 = vsel %vm1187_vm15, %v1185_v43, %v1182_v41  ;;  %v922_v22 = vsub.f32 0.0, %v890_v6  ;;  %v3462_v50 = vadd.f32 %v3378_v25, %v819_v14 }
 0x204   : > { %v1300_v53 = vadd.f32 %v1188_v47, %v852_v29  ;;  %v822_v47 = vpop.f32.mrf.mxu3 }
 0x205   : > { %v919_v58 = vsub.f32 0.0, %v887_v45  ;;  %v1395_v48 = vpop.f32.mrf.mxu1  ;;  %v891_v14 = vand.u32 2147483647, %v3462_v50 }
 0x206   : > { %2499 = vmatmul.msk.f32.gmra.mxu2 %vm621_vm1, %v3405_v12  ;;  %v2452_v26 = vadd.f32 -0.6931472, %v1300_v53  ;;  %v1194_v12 = vmul.f32 %v2745_v9, %v1193_v59  ;;  %v1396_v55 = vadd.f32 %v3373_v62, %v1395_v48 }
 0x207   : > { %v2749_v18 = vpop.eup %2748  ;;  %v975_v24 = vmul.f32 1.442695, %v919_v58  ;;  %v981_v58 = vmul.f32 1.442695, %v922_v22 }
 0x208   : > { %v2751_v46 = vpop.eup %2750  ;;  %v810_v7 = vpop.f32.mrf.mxu0  ;;  %1442 = vmatmul.f32.gmra.mxu1 %v2452_v26  ;;  %v1198_v16 = vadd.f32 1.0, %v2749_v18  ;;  %v1201_v17 = vmul.f32 -0.5, %v2749_v18  ;;  %v1204_v13 = vand.u32 2147483647, %v2749_v18  ;;  %v1673_v52 = vmul.f32 %v3295_v1, %v1396_v55 }
 0x209   : > { %2752 = vpow2.f32 %v975_v24  ;;  %v3454_v56 = vadd.f32 %v3378_v25, %v810_v7  ;;  %v1948_v63 = vpop.f32.mrf.mxu2  ;;  %v1191_v15 = vmul.f32 0.6931472, %v2751_v46  ;;  %v923_v1 = vsub.f32 0.0, %v891_v14 }
 0x20a   : > { %v3457_v54 = vmul.f32 %v1948_v63, %v1672_v32  ;;  %2754 = vlog2.f32 %v1198_v16  ;;  %v1202_v41 = vadd.f32 1.0, %v1201_v17  ;;  %v854_v16 = vmax.f32 %v3422_v27, 0.0 }
 0x20b   : > { %v888_v31 = vand.u32 2147483647, %v3454_v56  ;;  %v1197_v43 = vsel %vm1196_vm0, %v1194_v12, %v1191_v15  ;;  %vm1205_vm2 = vcmp.lt.f32.partialorder %v1204_v13, 0.0004427343  ;;  %v3481_v12 = vadd.f32 %v3378_v25, %v822_v47  ;;  %v1815_v13 = vpop.trf.xlu1 }
 0x20c   : > { %v1301_v39 = vadd.f32 %v1197_v43, %v853_v20  ;;  %v1203_v24 = vmul.f32 %v2749_v18, %v1202_v41  ;;  %v3485_v41 = vpop.permute.xlu2 %1635  ;;  %v825_v47 = vpop.f32.mrf.mxu3 }
 0x20d   : > { %v920_v9 = vsub.f32 0.0, %v888_v31  ;;  %v1398_v29 = vpop.f32.mrf.mxu1 }
 0x20e   : > { %2500 = vmatmul.msk.f32.gmra.mxu2 %vm621_vm1, %v3424_v60  ;;  %v2453_v45 = vadd.f32 -0.6931472, %v1301_v39  ;;  %v1399_v18 = vadd.f32 %v3373_v62, %v1398_v29  ;;  %v892_v29 = vand.u32 2147483647, %v3481_v12 }
 0x20f   : > { %v2753_v53 = vpop.eup %2752  ;;  %v977_v48 = vmul.f32 1.442695, %v920_v9 }
 0x210   : > { %v2755_v59 = vpop.eup %2754  ;;  %v813_v26 = vpop.f32.mrf.mxu0  ;;  %1445 = vmatmul.f32.gmra.mxu1 %v2453_v45  ;;  %v1207_v6 = vadd.f32 1.0, %v2753_v53  ;;  %v1210_v32 = vmul.f32 -0.5, %v2753_v53  ;;  %v1213_v55 = vand.u32 2147483647, %v2753_v53 }
 0x211   : > { %2756 = vpow2.f32 %v977_v48  ;;  %v3473_v46 = vadd.f32 %v3378_v25, %v813_v26  ;;  %v1951_v60 = vpop.f32.mrf.mxu2  ;;  %v1200_v7 = vmul.f32 0.6931472, %v2755_v59  ;;  %v1674_v48 = vmul.f32 %v3284_v0, %v1399_v18 }
 0x212   : > { %v3476_v17 = vmul.f32 %v1951_v60, %v1673_v52  ;;  %2758 = vlog2.f32 %v1207_v6  ;;  %v1211_v43 = vadd.f32 1.0, %v1210_v32  ;;  %v855_v6 = vmax.f32 %v3435_v5, 0.0 }
 0x213   : > { %2760 = vpow2.f32 %v981_v58  ;;  %v889_v63 = vand.u32 2147483647, %v3473_v46  ;;  %v1206_v15 = vsel %vm1205_vm2, %v1203_v24, %v1200_v7  ;;  %v983_v58 = vmul.f32 1.442695, %v923_v1 }
 0x214   : > { %v1302_v20 = vadd.f32 %v1206_v15, %v854_v16  ;;  %v1212_v52 = vmul.f32 %v2753_v53, %v1211_v43  ;;  %vm1214_vm3 = vcmp.lt.f32.partialorder %v1213_v55, 0.0004427343  ;;  %v924_v32 = vsub.f32 0.0, %v892_v29  ;;  %v3502_v55 = vpop.permute.xlu2 %1630 }
 0x215   : > { %v921_v22 = vsub.f32 0.0, %v889_v63  ;;  %v1401_v31 = vpop.f32.mrf.mxu1  ;;  %v3497_v15 = vadd.f32 %v3378_v25, %v825_v47 }
 0x216   : > { %2501 = vmatmul.msk.f32.gmra.mxu2 %vm621_vm1, %v3446_v35  ;;  %v2454_v27 = vadd.f32 -0.6931472, %v1302_v20  ;;  %v1402_v16 = vadd.f32 %v3373_v62, %v1401_v31  ;;  %v985_v43 = vmul.f32 1.442695, %v924_v32 }
 0x217   : > { %v2757_v39 = vpop.eup %2756  ;;  %v979_v9 = vmul.f32 1.442695, %v921_v22 }
 0x218   : > { %v2759_v45 = vpop.eup %2758  ;;  %1448 = vmatmul.f32.gmra.mxu1 %v2454_v27  ;;  %v1216_v59 = vadd.f32 1.0, %v2757_v39  ;;  %v1219_v24 = vmul.f32 -0.5, %v2757_v39  ;;  %v1222_v18 = vand.u32 2147483647, %v2757_v39  ;;  %v1675_v31 = vmul.f32 %v3272_v34, %v1402_v16 }
 0x219   : > { %v3489_v14 = vpop.eup %2760  ;;  %2762 = vpow2.f32 %v979_v9  ;;  %v1954_v35 = vpop.f32.mrf.mxu2  ;;  %v1209_v26 = vmul.f32 0.6931472, %v2759_v45  ;;  %v893_v9 = vand.u32 2147483647, %v3497_v15 }
 0x21a   : > { %v3492_v60 = vmul.f32 %v1954_v35, %v1674_v48  ;;  %2764 = vlog2.f32 %v1216_v59  ;;  %v1234_v0 = vadd.f32 1.0, %v3489_v14  ;;  %v1220_v53 = vadd.f32 1.0, %v1219_v24  ;;  %v1816_v48 = vpop.trf.xlu1  ;;  %v828_v59 = vpop.f32.mrf.mxu3 }
 0x21b   : > { %v1215_v7 = vsel %vm1214_vm3, %v1212_v52, %v1209_v26  ;;  %2766 = vpow2.f32 %v983_v58  ;;  %vm1223_vm4 = vcmp.lt.f32.partialorder %v1222_v18, 0.0004427343  ;;  %v1237_v52 = vmul.f32 -0.5, %v3489_v14 }
 0x21c   : > { %v1303_v63 = vadd.f32 %v1215_v7, %v855_v6  ;;  %2768 = vlog2.f32 %v1234_v0  ;;  %v1221_v29 = vmul.f32 %v2757_v39, %v1220_v53  ;;  %v925_v7 = vsub.f32 0.0, %v893_v9 }
 0x21d   : > { %v1404_v1 = vpop.f32.mrf.mxu1  ;;  %v3511_v39 = vadd.f32 %v3378_v25, %v828_v59 }
 0x21e   : > { %2502 = vmatmul.msk.f32.gmra.mxu2 %vm621_vm1, %v3466_v19  ;;  %v2455_v5 = vadd.f32 -0.6931472, %v1303_v63  ;;  %v856_v19 = vmax.f32 %v3454_v56, 0.0  ;;  %v1405_v24 = vadd.f32 %v3373_v62, %v1404_v1 }
 0x21f   : > { %v2763_v20 = vpop.eup %2762  ;;  %v894_v25 = vand.u32 2147483647, %v3511_v39 }
 0x220   : > { %v2765_v22 = vpop.eup %2764  ;;  %1451 = vmatmul.f32.vlgmr.msrb.gmra.mxu3 %v2455_v5  ;;  %v1225_v27 = vadd.f32 1.0, %v2763_v20  ;;  %v1228_v47 = vmul.f32 -0.5, %v2763_v20  ;;  %v1231_v0 = vand.u32 2147483647, %v2763_v20  ;;  %v1238_v5 = vadd.f32 1.0, %v1237_v52 }
 0x221   : > { %v1957_v45 = vpop.f32.mrf.mxu2  ;;  %v1218_v58 = vmul.f32 0.6931472, %v2765_v22  ;;  %v2767_v26 = vpop.eup %2766  ;;  %v1676_v1 = vmul.f32 %v3258_v3, %v1405_v24  ;;  %v1240_v22 = vand.u32 2147483647, %v3489_v14  ;;  %v926_v24 = vsub.f32 0.0, %v894_v25 }
 0x222   : > { %v3506_v35 = vmul.f32 %v1957_v45, %v1675_v31  ;;  %2770 = vlog2.f32 %v1225_v27  ;;  %v1229_v56 = vadd.f32 1.0, %v1228_v47  ;;  %v2769_v16 = vpop.eup %2768  ;;  %v1243_v53 = vadd.f32 1.0, %v2767_v26 }
 0x223   : > { %v1224_v34 = vsel %vm1223_vm4, %v1221_v29, %v1218_v58  ;;  %2772 = vpow2.f32 %v985_v43  ;;  %v987_v43 = vmul.f32 1.442695, %v925_v7  ;;  %v857_v45 = vmax.f32 %v3473_v46, 0.0  ;;  %v3522_v29 = vpop.permute.xlu2 %1625 }
 0x224   : > { %v1304_v6 = vadd.f32 %v1224_v34, %v856_v19  ;;  %v1230_v9 = vmul.f32 %v2763_v20, %v1229_v56  ;;  %vm1232_vm5 = vcmp.lt.f32.partialorder %v1231_v0, 0.0004427343  ;;  %2774 = vlog2.f32 %v1243_v53  ;;  %v1817_v34 = vpop.trf.xlu1 }
 0x225   : > { %v3513_v32 = vpop.f32.mrf.mxu1  ;;  %v1236_v19 = vmul.f32 0.6931472, %v2769_v16  ;;  %v1239_v3 = vmul.f32 %v3489_v14, %v1238_v5  ;;  %v1246_v59 = vmul.f32 -0.5, %v2767_v26  ;;  %vm1241_vm6 = vcmp.lt.f32.partialorder %v1240_v22, 0.0004427343 }
 0x226   : > { %2503 = vmatmul.msk.f32.gmra.mxu2 %vm621_vm1, %v1815_v13  ;;  %v2456_v63 = vadd.f32 -0.6931472, %v1304_v6  ;;  %2776 = vpow2.f32 %v987_v43  ;;  %v858_v46 = vmax.f32 %v3444_v36, 0.0  ;;  %v1249_v16 = vand.u32 2147483647, %v2767_v26 }
 0x227   : > { %v1242_v56 = vsel %vm1241_vm6, %v1239_v3, %v1236_v19  ;;  %v989_v14 = vmul.f32 1.442695, %v926_v24 }
 0x228   : > { %v2771_v18 = vpop.eup %2770  ;;  %1454 = vmatmul.f32.gmra.mxu3 %v2456_v63  ;;  %v1247_v63 = vadd.f32 1.0, %v1246_v59  ;;  %v1306_v5 = vadd.f32 %v1242_v56, %v858_v46  ;;  %vm1250_vm7 = vcmp.lt.f32.partialorder %v1249_v16, 0.0004427343 }
 0x229   : > { %v1960_v31 = vpop.f32.mrf.mxu2  ;;  %v1227_v27 = vmul.f32 0.6931472, %v2771_v18  ;;  %v2773_v13 = vpop.eup %2772 }
 0x22a   : > { %v3520_v58 = vmul.f32 %v1960_v31, %v1676_v1  ;;  %v1252_v7 = vadd.f32 1.0, %v2773_v13  ;;  %v2775_v0 = vpop.eup %2774  ;;  %v1248_v22 = vmul.f32 %v2767_v26, %v1247_v63  ;;  %v1255_v43 = vmul.f32 -0.5, %v2773_v13 }
 0x22b   : > { %v1233_v47 = vsel %vm1232_vm5, %v1230_v9, %v1227_v27  ;;  %v1245_v1 = vmul.f32 0.6931472, %v2775_v0  ;;  %v3531_v36 = vpop.permute.xlu2 %1620  ;;  %v859_v31 = vmax.f32 %v3462_v50, 0.0  ;;  %v2458_v27 = vadd.f32 -0.6931472, %v1306_v5 }
 0x22c   : > { %v1305_v52 = vadd.f32 %v1233_v47, %v857_v45  ;;  %2778 = vlog2.f32 %v1252_v7  ;;  %v2777_v18 = vpop.eup %2776  ;;  %v3535_v25 = vpop.trf.xlu1  ;;  %v1256_v47 = vadd.f32 1.0, %v1255_v43  ;;  %v1258_v26 = vand.u32 2147483647, %v2773_v13 }
 0x22d   : > { %v3525_v20 = vpop.f32.mrf.mxu1  ;;  %2780 = vpow2.f32 %v989_v14  ;;  %v1261_v9 = vadd.f32 1.0, %v2777_v18  ;;  %v1251_v45 = vsel %vm1250_vm7, %v1248_v22, %v1245_v1  ;;  %v860_v50 = vmax.f32 %v3481_v12, 0.0 }
 0x22e   : > { %2504 = vmatmul.msk.f32.gmra.mxu2 %vm621_vm1, %v1816_v48  ;;  %v2457_v6 = vadd.f32 -0.6931472, %v1305_v52  ;;  %v1307_v59 = vadd.f32 %v1251_v45, %v859_v31  ;;  %v1257_v46 = vmul.f32 %v2773_v13, %v1256_v47  ;;  %vm1259_vm8 = vcmp.lt.f32.partialorder %v1258_v26, 0.0004427343 }
 0x22f   : > { %2782 = vlog2.f32 %v1261_v9  ;;  %v1267_v1 = vand.u32 2147483647, %v2777_v18  ;;  %v861_v12 = vmax.f32 %v3497_v15, 0.0 }
 0x230   : > { %1457 = vmatmul.f32.gmra.mxu3 %v2457_v6  ;;  %v1264_v6 = vmul.f32 -0.5, %v2777_v18 }
 0x231   : > { %v3529_v53 = vpop.f32.mrf.mxu2  ;;  %vm1268_vm9 = vcmp.lt.f32.partialorder %v1267_v1, 0.0004427343 }
 0x232   : > { %v2779_v19 = vpop.eup %2778  ;;  %v1265_v16 = vadd.f32 1.0, %v1264_v6 }
 0x233   : > { %v2781_v52 = vpop.eup %2780  ;;  %v1254_v24 = vmul.f32 0.6931472, %v2779_v19  ;;  %v3542_v63 = vpop.permute.xlu2 %1615 }
 0x234   : > { %v1270_v56 = vadd.f32 1.0, %v2781_v52  ;;  %v1819_v5 = vpop.trf.xlu1  ;;  %v1266_v31 = vmul.f32 %v2777_v18, %v1265_v16 }
 0x235   : > { %v3533_v48 = vpop.f32.mrf.mxu1  ;;  %v1260_v0 = vsel %vm1259_vm8, %v1257_v46, %v1254_v24  ;;  %v2783_v14 = vpop.eup %2782 }
 0x236   : > { %2505 = vmatmul.msk.f32.gmra.mxu2 %vm621_vm1, %v1817_v34  ;;  %v2459_v34 = vadd.f32 -0.6931472, %v1307_v59  ;;  %v1308_v43 = vadd.f32 %v1260_v0, %v860_v50  ;;  %2784 = vlog2.f32 %v1270_v56  ;;  %v1263_v13 = vmul.f32 0.6931472, %v2783_v14 }
 0x237   : > { %v1276_v59 = vand.u32 2147483647, %v2781_v52  ;;  %v862_v0 = vmax.f32 %v3511_v39, 0.0 }
 0x238   : > { %1460 = vmatmul.f32.gmra.mxu3 %v2458_v27  ;;  %v1273_v27 = vmul.f32 -0.5, %v2781_v52  ;;  %v2460_v45 = vadd.f32 -0.6931472, %v1308_v43  ;;  %v1269_v47 = vsel %vm1268_vm9, %v1266_v31, %v1263_v13 }
 0x239   : > { %v3539_v3 = vpop.f32.mrf.mxu2  ;;  %vm1277_vm10 = vcmp.lt.f32.partialorder %v1276_v59, 0.0004427343 }
 0x23a   : > { %v1274_v19 = vadd.f32 1.0, %v1273_v27 }
 0x23b   : > { %v3547_v24 = vpop.permute.xlu2 %1610 }
 0x23c   : > { %v2785_v26 = vpop.eup %2784  ;;  %v1820_v6 = vpop.trf.xlu1  ;;  %v1275_v56 = vmul.f32 %v2781_v52, %v1274_v19 }
 0x23d   : > { %v1416_v7 = vpop.f32.mrf.mxu1  ;;  %v1272_v50 = vmul.f32 0.6931472, %v2785_v26 }
 0x23f   : > { %v1278_v14 = vsel %vm1277_vm10, %v1275_v56, %v1272_v50 }
 0x240   : > { %1463 = vmatmul.f32.gmra.mxu3 %v2459_v34  ;;  %v1309_v34 = vadd.f32 %v1269_v47, %v861_v12  ;;  %v1310_v1 = vadd.f32 %v1278_v14, %v862_v0  ;;  %v1417_v0 = vadd.f32 %v3373_v62, %v1416_v7 }
 0x241   : > { %v3544_v22 = vpop.f32.mrf.mxu2 }
 0x242   : > { %v2461_v16 = vadd.f32 -0.6931472, %v1309_v34  ;;  %v2462_v31 = vadd.f32 -0.6931472, %v1310_v1  ;;  %v1566_v1 = vpop.permute.xlu0 %1565 }
 0x243   : > { %v3550_v43 = vpop.permute.xlu2 %1605 }
 0x244   : > { %v1821_v13 = vpop.trf.xlu1 }
 0x245   : > { %v1419_v9 = vpop.f32.mrf.mxu1 }
 0x246   : > { %v1420_v26 = vadd.f32 %v3373_v62, %v1419_v9 }
 0x248   : > { %1466 = vmatmul.f32.gmra.mxu3 %v2460_v45 }
 0x249   : > { %v1972_v46 = vpop.f32.mrf.mxu2 }
 0x24b   : > { %v3553_v47 = vpop.permute.xlu2 %1600 }
 0x24c   : > { %v1822_v52 = vpop.trf.xlu1 }
 0x24d   : > { %v1422_v18 = vpop.f32.mrf.mxu1 }
 0x24e   : > { %v1423_v19 = vadd.f32 %v3373_v62, %v1422_v18  ;;  %v1414_v18 = vadd.f32 %v3373_v62, %v3533_v48 }
 0x250   : > { %1469 = vmatmul.f32.gmra.mxu3 %v2461_v16  ;;  %v1682_v50 = vmul.f32 %v3193_v8, %v1423_v19  ;;  %v1680_v8 = vmul.f32 %v3225_v2, %v1417_v0 }
 0x251   : > { %v1975_v15 = vpop.f32.mrf.mxu2 }
 0x252   : > { %v2044_v48 = vmul.f32 %v1972_v46, %v1680_v8 }
 0x253   : > { %v1591_v9 = vpop.permute.xlu2 %1590 }
 0x255   : > { %v1425_v27 = vpop.f32.mrf.mxu1 }
 0x256   : > { %v1426_v12 = vadd.f32 %v3373_v62, %v1425_v27  ;;  %v1561_v27 = vpop.permute.xlu1 %1560 }
 0x258   : > { %1472 = vmatmul.f32.gmra.mxu3 %v2462_v31  ;;  %v1683_v39 = vmul.f32 %v3180_v51, %v1426_v12  ;;  %v1411_v51 = vadd.f32 %v3373_v62, %v3525_v20  ;;  %v1679_v12 = vmul.f32 %v1566_v1, %v1414_v18 }
 0x259   : > { %v1978_v45 = vpop.f32.mrf.mxu2 }
 0x25a   : > { %v2046_v16 = vmul.f32 %v1978_v45, %v1682_v50  ;;  %v1408_v45 = vadd.f32 %v3373_v62, %v3513_v32  ;;  %v2043_v20 = vmul.f32 %v3544_v22, %v1679_v12  ;;  %v2849_v50 = vmov 1.0  }
 0x25c   : > { %v1677_v2 = vmul.f32 %v3241_v28, %v1408_v45 }
 0x25d   : > { %v1428_v59 = vpop.f32.mrf.mxu1 }
 0x25e   : > { %v1429_v14 = vadd.f32 %v3373_v62, %v1428_v59 }
 0x260   : > { %2506 = vmatmul.msk.f32.vlgmr.msra.gmra.mxu3 %vm621_vm1, %v3535_v25  ;;  %v1681_v25 = vmul.f32 %v3209_v37, %v1420_v26  ;;  %v1684_v7 = vmul.f32 %v1591_v9, %v1429_v14  ;;  %v3613_v26 = vld [vmem:[%s503_s23] sm:$0x3] }
 0x261   : > { %v1981_v34 = vpop.f32.mrf.mxu2 }
 0x262   : > { %v2047_v56 = vmul.f32 %v1981_v34, %v1683_v39  ;;  %v2045_v31 = vmul.f32 %v1975_v15, %v1681_v25  ;;  %v1678_v39 = vmul.f32 %v1561_v27, %v1411_v51  ;;  %v1733_v34 = vperm.slane %v3613_v26, 0 }
 0x264   : > { %2068 = vmatpush.msrb.mxu3 %v2047_v56  ;;  %v2042_v15 = vmul.f32 %v3539_v3, %v1678_v39  ;;  %vm1737_vm11 = vcmp.eq.s32.totalorder %v3042_v33, %v1733_v34  ;;  %vm1739_vm12 = vcmp.eq.s32.totalorder %v3049_v40, %v1733_v34  ;;  %vm1741_vm13 = vcmp.eq.s32.totalorder %v3056_v44, %v1733_v34 }
 0x266   : > { %2069 = vmatpush.msrb.mxu3 %v2046_v16 }
 0x268   : > { %2507 = vmatmul.msk.f32.gmra.mxu3 %vm621_vm1, %v1819_v5  ;;  %v2041_v5 = vmul.f32 %v3529_v53, %v1677_v2 }
 0x269   : > { %2070 = vmatpush.msrb.mxu3 %v2045_v31  ;;  %v1984_v37 = vpop.f32.mrf.mxu2 }
 0x26a   : > { %v3572_v19 = vmul.f32 %v1984_v37, %v1684_v7 }
 0x26b   : > { %2071 = vmatpush.msrb.mxu3 %v2044_v48 }
 0x26d   : > { %2072 = vmatpush.msrb.mxu3 %v2043_v20 }
 0x26f   : > { %2073 = vmatpush.msrb.mxu3 %v2042_v15 }
 0x270   : > { %2508 = vmatmul.msk.f32.gmra.mxu3 %vm621_vm1, %v1820_v6 }
 0x271   : > { %2074 = vmatpush.msrb.mxu3 %v2041_v5  ;;  %v3590_v32 = vpop.f32.mrf.mxu2 }
 0x273   : > { %2075 = vmatpush.msrb.mxu3 %v3520_v58 }
 0x275   : > { %2076 = vmatpush.msrb.mxu3 %v3506_v35 }
 0x277   : > { %2077 = vmatpush.msrb.mxu3 %v3492_v60 }
 0x278   : > { %2509 = vmatmul.msk.f32.gmra.mxu3 %vm621_vm1, %v1821_v13 }
 0x279   : > { %2078 = vmatpush.msrb.mxu3 %v3476_v17  ;;  %v3592_v58 = vpop.f32.mrf.mxu2 }
 0x27b   : > { %2079 = vmatpush.msrb.mxu3 %v3457_v54 }
 0x27d   : > { %2080 = vmatpush.msrb.mxu3 %v3438_v42 }
 0x27f   : > { %2081 = vmatpush.msrb.mxu3 %v3427_v61 }
 0x280   : > { %2510 = vmatmul.msk.f32.gmra.mxu3 %vm621_vm1, %v1822_v52  ;;  %vm1735_vm1 = vcmp.eq.s32.totalorder %v3035_v30, %v1733_v34 }
 0x281   : > { %2082 = vmatpush.msrb.mxu3 %v3412_v23  ;;  %v3595_v53 = vpop.f32.mrf.mxu2  ;;  %v3598_v23 = vpop.f32.mrf.mxu1 }
 0x283   : > { %2083 = vmatpush.msrb.mxu3 %v3397_v38 }
 0x288   : > { %2511 = vmatmul.msk.f32.vlgmr.msrb.gmra.mxu3 %vm1735_vm1, %v2849_v50 }
 0x289   : > { %v3600_v38 = vpop.f32.mrf.mxu2  ;;  %v3602_v46 = vpop.f32.mrf.mxu1 }
 0x290   : > { %2512 = vmatmul.msk.f32.gmra.mxu3 %vm1737_vm11, %v2849_v50 }
 0x291   : > { %v3604_v6 = vpop.f32.mrf.mxu2  ;;  %v3606_v52 = vpop.f32.mrf.mxu1 }
 0x298   : > { %2513 = vmatmul.msk.f32.gmra.mxu3 %vm1739_vm12, %v2849_v50 }
 0x299   : > { %v1440_v0 = vpop.f32.mrf.mxu1 }
 0x2a0   : > { %2514 = vmatmul.msk.f32.gmra.mxu3 %vm1741_vm13, %v2849_v50 }
 0x2a1   : > { %v1443_v18 = vpop.f32.mrf.mxu1 }
 0x2a2   : > { %v1444_v34 = vadd.f32 %v3373_v62, %v1443_v18 }
 0x2a3   : > { %v1452_v28 = vpop.f32.mrf.mxu3 }
 0x2a9   : > { %v1446_v8 = vpop.f32.mrf.mxu1 }
 0x2ab   : > { %v1455_v35 = vpop.f32.mrf.mxu3 }
 0x2ac   : > { %v1456_v5 = vadd.f32 %v3373_v62, %v1455_v35  ;;  %v1447_v35 = vadd.f32 %v3373_v62, %v1446_v8 }
 0x2b3   : > { %v1458_v60 = vpop.f32.mrf.mxu3 }
 0x2b4   : > { %v1459_v2 = vadd.f32 %v3373_v62, %v1458_v60  ;;  %v1693_v60 = vmul.f32 %v3485_v41, %v1456_v5  ;;  %v1690_v41 = vmul.f32 %v3531_v36, %v1447_v35 }
 0x2bb   : > { %v1461_v17 = vpop.f32.mrf.mxu3 }
 0x2bc   : > { %v1462_v37 = vadd.f32 %v3373_v62, %v1461_v17  ;;  %v1694_v17 = vmul.f32 %v3464_v57, %v1459_v2  ;;  %v2787_v57 = vld [vmem:[%s3794_s9] ss:$0 sm:$0xff] }
 0x2c3   : > { %v1464_v54 = vpop.f32.mrf.mxu3 }
 0x2c4   : > { %v1465_v42 = vadd.f32 %v3373_v62, %v1464_v54  ;;  %v1695_v54 = vmul.f32 %v3440_v4, %v1462_v37 }
 0x2c6   : > { %v1696_v61 = vmul.f32 %v3419_v10, %v1465_v42  ;;  %v3615_v10 = vpop.f32.mrf.mxu2 }
 0x2cb   : > { %v1467_v3 = vpop.f32.mrf.mxu3 }
 0x2cc   : > { %v1468_v27 = vadd.f32 %v3373_v62, %v1467_v3 }
 0x2ce   : > { %v2005_v16 = vpop.f32.mrf.mxu2  ;;  %v1697_v39 = vmul.f32 %v3403_v11, %v1468_v27 }
 0x2d3   : > { %v1470_v22 = vpop.f32.mrf.mxu3 }
 0x2d4   : > { %v1471_v9 = vadd.f32 %v3373_v62, %v1470_v22 }
 0x2d6   : > { %v2008_v25 = vpop.f32.mrf.mxu2  ;;  %v1698_v12 = vmul.f32 %v3386_v21, %v1471_v9  ;;  %v1453_v21 = vadd.f32 %v3373_v62, %v1452_v28 }
 0x2d8   : > { %v1692_v4 = vmul.f32 %v3502_v55, %v1453_v21  ;;  %v1689_v55 = vmul.f32 %v3542_v63, %v1444_v34 }
 0x2da   : > { %v2053_v18 = vmul.f32 %v3604_v6, %v1689_v55 }
 0x2db   : > { %v1473_v13 = vpop.f32.mrf.mxu3 }
 0x2dc   : > { %v1474_v51 = vadd.f32 %v3373_v62, %v1473_v13 }
 0x2de   : > { %v2011_v31 = vpop.f32.mrf.mxu2  ;;  %v1699_v7 = vmul.f32 %v3364_v49, %v1474_v51  ;;  %v1449_v49 = vpop.f32.mrf.mxu1  ;;  %v2054_v51 = vmul.f32 %v3615_v10, %v1690_v41 }
 0x2df   : > { %v1450_v11 = vadd.f32 %v3373_v62, %v1449_v49  ;;  %v1435_v62 = vadd.f32 %v2787_v57, %v3602_v46 }
 0x2e1   : > { %v1691_v28 = vmul.f32 %v3522_v29, %v1450_v11  ;;  %v1686_v63 = vmul.f32 %v3553_v47, %v1435_v62 }
 0x2e3   : > { %v2017_v59 = vpop.f32.mrf.mxu3  ;;  %v2050_v46 = vmul.f32 %v3592_v58, %v1686_v63  ;;  %v2064_v58 = vld [vmem:[#allocation3] sm:$0xff] }
 0x2e4   : > { %v2059_v22 = vmul.f32 %v2017_v59, %v1695_v54  ;;  %v1441_v59 = vadd.f32 %v2787_v57, %v1440_v0  ;;  %v1432_v0 = vadd.f32 %v2787_v57, %v3598_v23 }
 0x2e6   : > { %v2014_v3 = vpop.f32.mrf.mxu2  ;;  %v1688_v29 = vmul.f32 %v3547_v24, %v1441_v59  ;;  %v1734_v24 = vperm.slane %v3613_v26, 1 }
 0x2e7   : > { %v2058_v13 = vmul.f32 %v2014_v3, %v1694_v17 }
 0x2e8   : > { %vm1736_vm14 = vcmp.eq.s32.totalorder %v3035_v30, %v1734_v24  ;;  %vm1738_vm15 = vcmp.eq.s32.totalorder %v3042_v33, %v1734_v24  ;;  %vm1740_vm0 = vcmp.eq.s32.totalorder %v3049_v40, %v1734_v24  ;;  %vm1742_vm2 = vcmp.eq.s32.totalorder %v3056_v44, %v1734_v24  ;;  %v2065_v33 = vld [vmem:[#allocation3 + $0x18] sm:$0xff]  ;;  %v2066_v40 = vld [vmem:[#allocation3 + $0x8] sm:$0xff] }
 0x2eb   : > { %v2020_v56 = vpop.f32.mrf.mxu3 }
 0x2ec   : > { %v2060_v42 = vmul.f32 %v2020_v56, %v1696_v61  ;;  %v2057_v61 = vmul.f32 %v2011_v31, %v1693_v60  ;;  %v2056_v56 = vmul.f32 %v2008_v25, %v1692_v4 }
 0x2f3   : > { %v2023_v14 = vpop.f32.mrf.mxu3 }
 0x2f4   : > { %v2061_v15 = vmul.f32 %v2023_v14, %v1697_v39  ;;  %v2055_v14 = vmul.f32 %v2005_v16, %v1691_v28  ;;  %v2052_v16 = vmul.f32 %v3600_v38, %v1688_v29 }
 0x2fb   : > { %v2026_v1 = vpop.f32.mrf.mxu3 }
 0x2fc   : > { %v2062_v20 = vmul.f32 %v2026_v1, %v1698_v12  ;;  %v1438_v1 = vadd.f32 %v2787_v57, %v3606_v52  ;;  %v1596_v52 = vpop.permute.xlu1 %1595 }
 0x2fd   : > { %v1685_v25 = vmul.f32 %v1596_v52, %v1432_v0 }
 0x2fe   : > { %v1687_v36 = vmul.f32 %v3550_v43, %v1438_v1 }
 0x2ff   : > { %v2049_v6 = vmul.f32 %v3590_v32, %v1685_v25 }
 0x300   : > { %v2051_v10 = vmul.f32 %v3595_v53, %v1687_v36 }
 0x303   : > { %v2029_v45 = vpop.f32.mrf.mxu3 }
 0x304   : > { %v2063_v48 = vmul.f32 %v2029_v45, %v1699_v7 }
 0x306   : > { %2097 = vmatpush.msra.mxu3 %v2063_v48 }
 0x308   : > { %2098 = vmatpush.msra.mxu3 %v2062_v20 }
 0x30a   : > { %2099 = vmatpush.msra.mxu3 %v2061_v15 }
 0x30b   : > { %v2085_v43 = vpop.f32.mrf.mxu3 }
 0x30c   : > { %2100 = vmatpush.msra.mxu3 %v2060_v42 }
 0x30e   : > { %2101 = vmatpush.msra.mxu3 %v2059_v22 }
 0x310   : > { %2102 = vmatpush.msra.mxu3 %v2058_v13 }
 0x312   : > { %2103 = vmatpush.msra.mxu3 %v2057_v61 }
 0x313   : > { %v2088_v47 = vpop.f32.mrf.mxu3 }
 0x314   : > { %2104 = vmatpush.msra.mxu3 %v2056_v56 }
 0x316   : > { %2105 = vmatpush.msra.mxu3 %v2055_v14 }
 0x318   : > { %2106 = vmatpush.msra.mxu3 %v2054_v51 }
 0x31a   : > { %2107 = vmatpush.msra.mxu3 %v2053_v18 }
 0x31b   : > { %v2091_v32 = vpop.f32.mrf.mxu3 }
 0x31c   : > { %2108 = vmatpush.msra.mxu3 %v2052_v16 }
 0x31e   : > { %2109 = vmatpush.msra.mxu3 %v2051_v10 }
 0x320   : > { %2110 = vmatpush.msra.mxu3 %v2050_v46 }
 0x322   : > { %2111 = vmatpush.msra.mxu3 %v2049_v6 }
 0x323   : > { %v2094_v30 = vpop.f32.mrf.mxu3 }
 0x324   : > { %2112 = vmatpush.msra.mxu3 %v3572_v19 }
 0x325   : > { %2515 = vmatmul.msk.f32.vlgmr.msra.gmra.mxu3 %vm1736_vm14, %v2849_v50 }
 0x32d   : > { %2516 = vmatmul.msk.f32.gmra.mxu3 %vm1738_vm15, %v2849_v50 }
 0x335   : > { %2517 = vmatmul.msk.f32.gmra.mxu3 %vm1740_vm0, %v2849_v50 }
 0x33d   : > { %2518 = vmatmul.msk.f32.gmra.mxu3 %vm1742_vm2, %v2849_v50  ;;  %v2067_v50 = vld [vmem:[#allocation3 + $0x10] sm:$0xff] }
 0x3a8   : > { %v2114_v19 = vpop.f32.mrf.mxu3 }
 0x3a9   : > { %v2115_v53 = vadd.f32 %v2114_v19, %v2085_v43 }
 0x3ab   : > { %v2126_v23 = vadd.f32 %v2115_v53, %v2064_v58 }
 0x3ad   : > { %2130 = vst [vmem:[#allocation3] sm:$0xff] %v2126_v23 }
 0x3b0   : > { %v2117_v38 = vpop.f32.mrf.mxu3 }
 0x3b1   : > { %v2118_v26 = vadd.f32 %v2117_v38, %v2088_v47 }
 0x3b3   : > { %v2127_v9 = vadd.f32 %v2118_v26, %v2065_v33 }
 0x3b5   : > { %2131 = vst [vmem:[#allocation3 + $0x18] sm:$0xff] %v2127_v9 }
 0x3b8   : > { %v2120_v8 = vpop.f32.mrf.mxu3 }
 0x3b9   : > { %v2121_v31 = vadd.f32 %v2120_v8, %v2091_v32 }
 0x3bb   : > { %v2128_v44 = vadd.f32 %v2121_v31, %v2066_v40 }
 0x3bd   : > { %2132 = vst [vmem:[#allocation3 + $0x8] sm:$0xff] %v2128_v44 }
 0x3c0   : > { %v2123_v27 = vpop.f32.mrf.mxu3 }
 0x3c1   : > { %v2124_v7 = vadd.f32 %v2123_v27, %v2094_v30  ;;  %2137 = sbr.rel (%p2519_p6) target bundleno = 1304 (0x518), region = 84 }
 0x3c3   : > { %v2129_v45 = vadd.f32 %v2124_v7, %v2067_v50 }
 0x3c5   : > { %2133 = vst [vmem:[#allocation3 + $0x10] sm:$0xff] %v2129_v45 }
 0x3c6   : > { %v2157_v12 = vld [vmem:[%s3795_s10 + $0x78] sm:$0xff]  ;;  %v2156_v48 = vld [vmem:[%s3795_s10 + $0x70] sm:$0xff]  ;;  %v2155_v37 = vld [vmem:[%s3795_s10 + $0x68] sm:$0xff] }
 0x3c7   : > { %2162 = vmatpush.msra.mxu0 %v2157_v12  ;;  %2600 = vmatpush.msra.mxu2 %v2157_v12  ;;  %v2154_v39 = vld [vmem:[%s3795_s10 + $0x60] sm:$0xff]  ;;  %v2153_v20 = vld [vmem:[%s3795_s10 + $0x58] sm:$0xff]  ;;  %v2152_v2 = vld [vmem:[%s3795_s10 + $0x50] sm:$0xff] }
 0x3c8   : > { %v2151_v15 = vld [vmem:[%s3795_s10 + $0x48] sm:$0xff]  ;;  %v2150_v5 = vld [vmem:[%s3795_s10 + $0x40] sm:$0xff]  ;;  %v2149_v54 = vld [vmem:[%s3795_s10 + $0x38] sm:$0xff] }
 0x3c9   : > { %2163 = vmatpush.msra.mxu0 %v2156_v48  ;;  %2601 = vmatpush.msra.mxu2 %v2156_v48  ;;  %v2148_v42 = vld [vmem:[%s3795_s10 + $0x30] sm:$0xff]  ;;  %v2147_v49 = vld [vmem:[%s3795_s10 + $0x28] sm:$0xff]  ;;  %v2146_v3 = vld [vmem:[%s3795_s10 + $0x20] sm:$0xff] }
 0x3ca   : > { %v2145_v21 = vld [vmem:[%s3795_s10 + $0x18] sm:$0xff]  ;;  %v2144_v17 = vld [vmem:[%s3795_s10 + $0x10] sm:$0xff]  ;;  %v2143_v22 = vld [vmem:[%s3795_s10 + $0x8] sm:$0xff] }
 0x3cb   : > { %2164 = vmatpush.msra.mxu0 %v2155_v37  ;;  %2602 = vmatpush.msra.mxu2 %v2155_v37  ;;  %v2142_v11 = vld [vmem:[%s3795_s10] sm:$0xff]  ;;  %v2140_v13 = vld [vmem:[#allocation3 + $0x8] sm:$0xff]  ;;  %v2139_v35 = vld [vmem:[#allocation3 + $0x18] sm:$0xff] }
 0x3cc   : > { %v2138_v60 = vld [vmem:[#allocation3] sm:$0xff]  ;;  %v2141_v4 = vld [vmem:[#allocation3 + $0x10] sm:$0xff]  ;;  %v2270_v61 = vld [vmem:[%s3797_s12 + $0x78] sm:$0xff] }
 0x3cd   : > { %2165 = vmatpush.msra.mxu0 %v2154_v39  ;;  %2603 = vmatpush.msra.mxu2 %v2154_v39  ;;  %v2269_v34 = vld [vmem:[%s3797_s12 + $0x70] sm:$0xff]  ;;  %v2268_v28 = vld [vmem:[%s3797_s12 + $0x68] sm:$0xff]  ;;  %v2267_v56 = vld [vmem:[%s3797_s12 + $0x60] sm:$0xff] }
 0x3ce   : > { %2275 = vmatpush.msra.mxu1 %v2270_v61  ;;  %2616 = vmatpush.msra.mxu3 %v2270_v61  ;;  %v2266_v57 = vld [vmem:[%s3797_s12 + $0x58] sm:$0xff]  ;;  %v2265_v59 = vld [vmem:[%s3797_s12 + $0x50] sm:$0xff]  ;;  %v2264_v41 = vld [vmem:[%s3797_s12 + $0x48] sm:$0xff] }
 0x3cf   : > { %2166 = vmatpush.msra.mxu0 %v2153_v20  ;;  %2604 = vmatpush.msra.mxu2 %v2153_v20  ;;  %v2263_v14 = vld [vmem:[%s3797_s12 + $0x40] sm:$0xff]  ;;  %v2262_v1 = vld [vmem:[%s3797_s12 + $0x38] sm:$0xff]  ;;  %v2261_v55 = vld [vmem:[%s3797_s12 + $0x30] sm:$0xff] }
 0x3d0   : > { %2276 = vmatpush.msra.mxu1 %v2269_v34  ;;  %2617 = vmatpush.msra.mxu3 %v2269_v34  ;;  %v2260_v51 = vld [vmem:[%s3797_s12 + $0x28] sm:$0xff]  ;;  %v2259_v62 = vld [vmem:[%s3797_s12 + $0x20] sm:$0xff]  ;;  %v2258_v29 = vld [vmem:[%s3797_s12 + $0x18] sm:$0xff] }
 0x3d1   : > { %2167 = vmatpush.msra.mxu0 %v2152_v2  ;;  %2605 = vmatpush.msra.mxu2 %v2152_v2  ;;  %v2257_v18 = vld [vmem:[%s3797_s12 + $0x10] sm:$0xff]  ;;  %v2256_v0 = vld [vmem:[%s3797_s12 + $0x8] sm:$0xff]  ;;  %v2255_v36 = vld [vmem:[%s3797_s12] sm:$0xff] }
 0x3d2   : > { %2277 = vmatpush.msra.mxu1 %v2268_v28  ;;  %2618 = vmatpush.msra.mxu3 %v2268_v28  ;;  %v2788_v16 = vld [vmem:[%s3796_s11] ss:$0 sm:$0xff] }
 0x3d3   : > { %2168 = vmatpush.msra.mxu0 %v2151_v15  ;;  %2606 = vmatpush.msra.mxu2 %v2151_v15 }
 0x3d4   : > { %2278 = vmatpush.msra.mxu1 %v2267_v56  ;;  %2619 = vmatpush.msra.mxu3 %v2267_v56 }
 0x3d5   : > { %2169 = vmatpush.msra.mxu0 %v2150_v5  ;;  %2607 = vmatpush.msra.mxu2 %v2150_v5 }
 0x3d6   : > { %2279 = vmatpush.msra.mxu1 %v2266_v57  ;;  %2620 = vmatpush.msra.mxu3 %v2266_v57 }
 0x3d7   : > { %2170 = vmatpush.msra.mxu0 %v2149_v54  ;;  %2608 = vmatpush.msra.mxu2 %v2149_v54 }
 0x3d8   : > { %2280 = vmatpush.msra.mxu1 %v2265_v59  ;;  %2621 = vmatpush.msra.mxu3 %v2265_v59 }
 0x3d9   : > { %2171 = vmatpush.msra.mxu0 %v2148_v42  ;;  %2609 = vmatpush.msra.mxu2 %v2148_v42 }
 0x3da   : > { %2281 = vmatpush.msra.mxu1 %v2264_v41  ;;  %2622 = vmatpush.msra.mxu3 %v2264_v41 }
 0x3db   : > { %2172 = vmatpush.msra.mxu0 %v2147_v49  ;;  %2610 = vmatpush.msra.mxu2 %v2147_v49 }
 0x3dc   : > { %2282 = vmatpush.msra.mxu1 %v2263_v14  ;;  %2623 = vmatpush.msra.mxu3 %v2263_v14 }
 0x3dd   : > { %2173 = vmatpush.msra.mxu0 %v2146_v3  ;;  %2611 = vmatpush.msra.mxu2 %v2146_v3 }
 0x3de   : > { %2283 = vmatpush.msra.mxu1 %v2262_v1  ;;  %2624 = vmatpush.msra.mxu3 %v2262_v1 }
 0x3df   : > { %2174 = vmatpush.msra.mxu0 %v2145_v21  ;;  %2612 = vmatpush.msra.mxu2 %v2145_v21 }
 0x3e0   : > { %2284 = vmatpush.msra.mxu1 %v2261_v55  ;;  %2625 = vmatpush.msra.mxu3 %v2261_v55 }
 0x3e1   : > { %2175 = vmatpush.msra.mxu0 %v2144_v17  ;;  %2613 = vmatpush.msra.mxu2 %v2144_v17 }
 0x3e2   : > { %2285 = vmatpush.msra.mxu1 %v2260_v51  ;;  %2626 = vmatpush.msra.mxu3 %v2260_v51 }
 0x3e3   : > { %2176 = vmatpush.msra.mxu0 %v2143_v22  ;;  %2614 = vmatpush.msra.mxu2 %v2143_v22 }
 0x3e4   : > { %2286 = vmatpush.msra.mxu1 %v2259_v62  ;;  %2627 = vmatpush.msra.mxu3 %v2259_v62 }
 0x3e5   : > { %2177 = vmatpush.msra.mxu0 %v2142_v11  ;;  %2615 = vmatpush.msra.mxu2 %v2142_v11 }
 0x3e6   : > { %2178 = vmatmul.f32.vlgmr.msra.gmra.mxu0 %v2138_v60  ;;  %2184 = vmatmul.f32.vlgmr.msra.gmra.mxu2 %v2140_v13 }
 0x3e7   : > { %2287 = vmatpush.msra.mxu1 %v2258_v29  ;;  %2628 = vmatpush.msra.mxu3 %v2258_v29 }
 0x3e9   : > { %2288 = vmatpush.msra.mxu1 %v2257_v18  ;;  %2629 = vmatpush.msra.mxu3 %v2257_v18 }
 0x3eb   : > { %2289 = vmatpush.msra.mxu1 %v2256_v0  ;;  %2630 = vmatpush.msra.mxu3 %v2256_v0 }
 0x3ed   : > { %2290 = vmatpush.msra.mxu1 %v2255_v36  ;;  %2631 = vmatpush.msra.mxu3 %v2255_v36 }
 0x3ee   : > { %2181 = vmatmul.f32.gmra.mxu0 %v2139_v35  ;;  %2187 = vmatmul.f32.gmra.mxu2 %v2141_v4 }
 0x463   : > { %v2179_v52 = vpop.f32.mrf.mxu0 }
 0x464   : > { %v2180_v63 = vadd.f32 %v2788_v16, %v2179_v52 }
 0x466   : > { %v2195_v10 = vand.u32 2147483647, %v2180_v63  ;;  %v2191_v5 = vmax.f32 %v2180_v63, 0.0 }
 0x468   : > { %v2199_v25 = vsub.f32 0.0, %v2195_v10 }
 0x469   : > { %v2185_v46 = vpop.f32.mrf.mxu2 }
 0x46a   : > { %v2203_v24 = vmul.f32 1.442695, %v2199_v25  ;;  %v2186_v6 = vadd.f32 %v2788_v16, %v2185_v46  ;;  %v2789_v46 = vld [vmem:[%s3798_s13] ss:$0 sm:$0xff] }
 0x46b   : > { %v2182_v43 = vpop.f32.mrf.mxu0 }
 0x46c   : > { %2790 = vpow2.f32 %v2203_v24  ;;  %v2197_v47 = vand.u32 2147483647, %v2186_v6  ;;  %v2183_v32 = vadd.f32 %v2788_v16, %v2182_v43  ;;  %v2193_v56 = vmax.f32 %v2186_v6, 0.0 }
 0x46e   : > { %v2201_v30 = vsub.f32 0.0, %v2197_v47  ;;  %v2196_v58 = vand.u32 2147483647, %v2183_v32  ;;  %v2192_v41 = vmax.f32 %v2183_v32, 0.0 }
 0x470   : > { %v2207_v19 = vmul.f32 1.442695, %v2201_v30  ;;  %v2200_v53 = vsub.f32 0.0, %v2196_v58 }
 0x471   : > { %v2188_v23 = vpop.f32.mrf.mxu2 }
 0x472   : > { %v2791_v33 = vpop.eup %2790  ;;  %2792 = vpow2.f32 %v2207_v19  ;;  %v2205_v38 = vmul.f32 1.442695, %v2200_v53  ;;  %v3771_v26 = vadd.f32 %v2788_v16, %v2188_v23 }
 0x473   : > { %v2211_v9 = vadd.f32 1.0, %v2791_v33  ;;  %v2214_v40 = vmul.f32 -0.5, %v2791_v33  ;;  %v2217_v50 = vand.u32 2147483647, %v2791_v33 }
 0x474   : > { %2794 = vpow2.f32 %v2205_v38  ;;  %v2198_v8 = vand.u32 2147483647, %v3771_v26  ;;  %v2194_v52 = vmax.f32 %v3771_v26, 0.0 }
 0x475   : > { %2796 = vlog2.f32 %v2211_v9  ;;  %v2215_v44 = vadd.f32 1.0, %v2214_v40  ;;  %vm2218_vm3 = vcmp.lt.f32.partialorder %v2217_v50, 0.0004427343 }
 0x476   : > { %v2202_v31 = vsub.f32 0.0, %v2198_v8 }
 0x477   : > { %v2216_v48 = vmul.f32 %v2791_v33, %v2215_v44 }
 0x478   : > { %v2793_v27 = vpop.eup %2792  ;;  %v2209_v7 = vmul.f32 1.442695, %v2202_v31 }
 0x479   : > { %v2229_v45 = vadd.f32 1.0, %v2793_v27  ;;  %v2232_v37 = vmul.f32 -0.5, %v2793_v27  ;;  %v2235_v21 = vand.u32 2147483647, %v2793_v27 }
 0x47a   : > { %v2795_v12 = vpop.eup %2794  ;;  %2798 = vpow2.f32 %v2209_v7 }
 0x47b   : > { %v2797_v39 = vpop.eup %2796  ;;  %2800 = vlog2.f32 %v2229_v45  ;;  %v2220_v20 = vadd.f32 1.0, %v2795_v12  ;;  %v2223_v15 = vmul.f32 -0.5, %v2795_v12  ;;  %v2233_v42 = vadd.f32 1.0, %v2232_v37 }
 0x47c   : > { %v2213_v2 = vmul.f32 0.6931472, %v2797_v39  ;;  %v2226_v17 = vand.u32 2147483647, %v2795_v12  ;;  %vm2236_vm4 = vcmp.lt.f32.partialorder %v2235_v21, 0.0004427343 }
 0x47d   : > { %2802 = vlog2.f32 %v2220_v20  ;;  %v2224_v49 = vadd.f32 1.0, %v2223_v15  ;;  %v2234_v4 = vmul.f32 %v2793_v27, %v2233_v42 }
 0x47e   : > { %v2219_v54 = vsel %vm2218_vm3, %v2216_v48, %v2213_v2  ;;  %vm2227_vm5 = vcmp.lt.f32.partialorder %v2226_v17, 0.0004427343 }
 0x47f   : > { %v2247_v3 = vadd.f32 %v2219_v54, %v2191_v5  ;;  %v2225_v61 = vmul.f32 %v2795_v12, %v2224_v49 }
 0x480   : > { %v2799_v22 = vpop.eup %2798 }
 0x481   : > { %v2801_v11 = vpop.eup %2800  ;;  %v2520_v60 = vadd.f32 -0.6931472, %v2247_v3  ;;  %v2238_v13 = vadd.f32 1.0, %v2799_v22  ;;  %v2241_v34 = vmul.f32 -0.5, %v2799_v22  ;;  %v2244_v29 = vand.u32 2147483647, %v2799_v22 }
 0x482   : > { %v2231_v35 = vmul.f32 0.6931472, %v2801_v11 }
 0x483   : > { %v2803_v28 = vpop.eup %2802  ;;  %2291 = vmatmul.f32.vlgmr.msra.gmra.mxu1 %v2520_v60  ;;  %2804 = vlog2.f32 %v2238_v13  ;;  %v2242_v55 = vadd.f32 1.0, %v2241_v34  ;;  %vm2245_vm6 = vcmp.lt.f32.partialorder %v2244_v29, 0.0004427343 }
 0x484   : > { %v2237_v57 = vsel %vm2236_vm4, %v2234_v4, %v2231_v35  ;;  %v2222_v59 = vmul.f32 0.6931472, %v2803_v28 }
 0x485   : > { %v2249_v14 = vadd.f32 %v2237_v57, %v2193_v56  ;;  %v2243_v16 = vmul.f32 %v2799_v22, %v2242_v55 }
 0x486   : > { %v2228_v1 = vsel %vm2227_vm5, %v2225_v61, %v2222_v59 }
 0x487   : > { %v2522_v51 = vadd.f32 -0.6931472, %v2249_v14  ;;  %v2248_v62 = vadd.f32 %v2228_v1, %v2192_v41 }
 0x489   : > { %v2805_v18 = vpop.eup %2804  ;;  %2297 = vmatmul.f32.vlgmr.msra.gmra.mxu3 %v2522_v51  ;;  %v2521_v0 = vadd.f32 -0.6931472, %v2248_v62 }
 0x48a   : > { %v2240_v36 = vmul.f32 0.6931472, %v2805_v18 }
 0x48b   : > { %2294 = vmatmul.f32.gmra.mxu1 %v2521_v0 }
 0x48c   : > { %v2246_v63 = vsel %vm2245_vm6, %v2243_v16, %v2240_v36 }
 0x48d   : > { %v2250_v10 = vadd.f32 %v2246_v63, %v2194_v52 }
 0x48f   : > { %v2523_v25 = vadd.f32 -0.6931472, %v2250_v10 }
 0x491   : > { %2300 = vmatmul.f32.gmra.mxu3 %v2523_v25 }
 0x500   : > { %v2292_v24 = vpop.f32.mrf.mxu1 }
 0x501   : > { %v2293_v6 = vadd.f32 %v2789_v46, %v2292_v24 }
 0x503   : > { %2304 = vst [vmem:[#allocation4] sm:$0xff] %v2293_v6 }
 0x508   : > { %v2295_v43 = vpop.f32.mrf.mxu1 }
 0x509   : > { %v2296_v47 = vadd.f32 %v2789_v46, %v2295_v43 }
 0x50b   : > { %2305 = vst [vmem:[#allocation4 + $0x8] sm:$0xff] %v2296_v47 }
 0x50c   : > { %v2298_v32 = vpop.f32.mrf.mxu3 }
 0x50d   : > { %v2299_v30 = vadd.f32 %v2789_v46, %v2298_v32 }
 0x50f   : > { %2306 = vst [vmem:[#allocation4 + $0x10] sm:$0xff] %v2299_v30 }
 0x514   : > { %v2301_v58 = vpop.f32.mrf.mxu3 }
 0x515   : > { %v2302_v19 = vadd.f32 %v2789_v46, %v2301_v58 }
 0x517   : > { %2307 = vst [vmem:[#allocation4 + $0x18] sm:$0xff] %v2302_v19 }
 0x518 PF: > { %p2636_p7 = scmp.eq.s32.totalorder %s2934_s30, 1  ;;  %s2850_s28 = smov [#allocation4]  }
 0x519   : > { %s2313_s15 = sshll.u32 %s2850_s28, 4  ;;  %s2315_s29 = sshll.u32 %s3799_s14, 4  ;;  %s2314_s15 = int_to_ptr.vmem [resolvable:$true] %s2313_s15  ;;  %s2316_s29 = int_to_ptr.hbm [resolvable:$true] %s2315_s29 }
 0x51a   : > { %s2851_s20 = smov 128   ;;  %s2852_s21 = smov 8  }
 0x51b   : > { %2633 = dma.vmem_to_hbm [thread:$0]  (%p2636_p7), %s2314_s15, 512, %s2316_s29, [#allocation5], %s2851_s20, %s2851_s20, %s2852_s21  }
 0x51c   : > { %2839 = dma.done.wait (%p2636_p7), [#allocation5], 512  }
 0x51d   : > { %2841 = vsyncadd (%p2636_p7), [#allocation5], 4294966784 }
 0x51e PF: > { %s3804_s22 = sld [smem:[#allocation7_spill]] }
 0x524   : > { %s25_s29 = sadd.s32 1, %s3804_s22  }
 0x525   : > { %p22_p8 = scmp.ge.s32.totalorder %s25_s29, 4  }
 0x527   :  { %24 = sbr.rel (!%p22_p8) target bundleno = 3 (0x3), region = 120 }
 0x52c   :  { %2332 = vsyncpa [#allocation5], 1 }
 0x52d   :  { %2334 = vsyncpa [#allocation5 + $0x1], 1 }

</bundles_post_ra>
